<compile_context>
chip_gen: v7x
topology: tpu7x:2x2x1
jax: 0.10.0
libtpu: 0.0.40
codegen_flags: <defaults>
</compile_context>

<pallas_src>
import jax
import jax.numpy as jnp
from jax.experimental import pallas as pl
from jax.experimental.pallas import tpu as pltpu


OUT_W = 128  # lane-dense padded output width for the final (H, 1) layer


def discriminator_kernel(
    img_ref,      # (TB, IMG_DIM)        f32  (cast to bf16 in-kernel)
    onehot_ref,   # (TB, K_LAB)          bf16 (zero-padded one-hot, lane-dense)
    w1i_ref,      # (IMG_DIM, H)         bf16 (image rows of W1)
    w1l_ref,      # (K_LAB, H)           bf16 (= emb_tbl @ label rows of W1, padded)
    b1_ref,       # (1, H)               bf16
    w2_ref,       # (H, H)               bf16
    b2_ref,       # (1, H)               bf16
    w3_ref,       # (H, H)               bf16
    b3_ref,       # (1, H)               bf16
    w4_ref,       # (H, OUT_W)           bf16 (col 0 = W4, rest zero)
    out_ref,      # (TB, OUT_W)          bf16 (only col 0 is meaningful)
):
    cdt = w1i_ref.dtype  # bf16 compute dtype

    def leaky(x):
        # max(x, 0.2*x) == LeakyReLU(0.2)(x); cheaper than cmp+select.
        return jnp.maximum(x, 0.2 * x)

    # Layer 1: concat([img, emb], -1) @ W1 == img @ W1_img + onehot @ (emb_tbl @ W1_lab)
    img = img_ref[...].astype(cdt)
    acc = jnp.dot(img, w1i_ref[...], preferred_element_type=jnp.float32)
    acc = acc + jnp.dot(onehot_ref[...], w1l_ref[...],
                        preferred_element_type=jnp.float32)
    h = leaky(acc.astype(cdt) + b1_ref[...])          # bf16 epilogue

    # Layer 2 (+ Dropout(0.4) as eval-mode identity)
    acc = jnp.dot(h, w2_ref[...], preferred_element_type=jnp.float32)
    h = leaky(acc.astype(cdt) + b2_ref[...])

    # Layer 3 (+ Dropout(0.4) as eval-mode identity)
    acc = jnp.dot(h, w3_ref[...], preferred_element_type=jnp.float32)
    h = leaky(acc.astype(cdt) + b3_ref[...])

    # Output layer (lane-dense padded N=128; b4 added in the wrapper)
    acc = jnp.dot(h, w4_ref[...], preferred_element_type=jnp.float32)
    out_ref[...] = acc.astype(out_ref.dtype)


def _round_up(x, m):
    return ((x + m - 1) // m) * m


def _choose_tile_b(batch, tile_b):
    """Pick a batch tile: big to amortize per-step overhead, multiple of 16
    (bf16 sublanes) / 256 (MXU) when possible, and >=2 tiles when B permits
    so both v7x TensorCores are fed."""
    if batch >= 2 * tile_b:
        return tile_b
    if batch >= 512:
        return _round_up(pl.cdiv(batch, 2), 256)   # 2 tiles, multiple of 256
    if batch >= 32:
        return _round_up(pl.cdiv(batch, 2), 16)    # 2 small tiles
    return _round_up(max(batch, 1), 16)            # single tiny tile


def discriminator_forward(img, labels, params, n_classes,
                          tile_b=512, compute_dtype=jnp.bfloat16):
    """img: (B, C, H, W) float32 (NCHW); labels: (B,) int32."""
    (emb_tbl, w1, b1, w2, b2, w3, b3, w4, b4) = params

    B = img.shape[0]
    img_flat = img.reshape(B, -1).astype(jnp.float32)              # (B, IMG_DIM), no-copy reshape
    img_dim = img_flat.shape[1]
    hidden = w1.shape[1]
    k_lab = max(128, _round_up(n_classes, 128))                    # lane-dense label width

    # --- wrapper-side weight plumbing (exact, f32) ---------------------------
    hp = jax.lax.Precision.HIGHEST
    w1_img = w1[:img_dim, :]                                       # (IMG_DIM, H)
    w1_lab_eff = jnp.dot(emb_tbl.astype(jnp.float32), w1[img_dim:, :],
                         precision=hp)                             # (N_CLASSES, H)
    w1_lab_pad = jnp.zeros((k_lab, hidden), jnp.float32).at[:n_classes, :].set(w1_lab_eff)
    w4_pad = jnp.zeros((hidden, OUT_W), jnp.float32).at[:, 0:1].set(w4)

    # Lane-dense zero-padded one-hot (columns >= n_classes are zero).
    onehot = jax.nn.one_hot(labels, k_lab, dtype=compute_dtype)    # (B, K_LAB)

    # --- batch tiling / padding ----------------------------------------------
    tb = _choose_tile_b(B, tile_b)
    b_pad = pl.cdiv(B, tb) * tb
    pad = b_pad - B
    if pad:
        img_flat = jnp.pad(img_flat, ((0, pad), (0, 0)))
        onehot = jnp.pad(onehot, ((0, pad), (0, 0)))

    # --- weight / bias casts (weights bf16, biases bf16 for the bf16 epilogue)
    w1i_c = w1_img.astype(compute_dtype)
    w1l_c = w1_lab_pad.astype(compute_dtype)
    w2_c = w2.astype(compute_dtype)
    w3_c = w3.astype(compute_dtype)
    w4_c = w4_pad.astype(compute_dtype)
    b1_c = b1.reshape(1, hidden).astype(compute_dtype)
    b2_c = b2.reshape(1, hidden).astype(compute_dtype)
    b3_c = b3.reshape(1, hidden).astype(compute_dtype)

    # Image stays f32; it is cast to bf16 inside the kernel (avoids an extra
    # read+write HBM pass by a separate XLA cast op).
    inputs = (img_flat, onehot, w1i_c, w1l_c, b1_c, w2_c, b2_c, w3_c, b3_c, w4_c)

    def resident(arr):
        # Weights/biases: whole array resident in VMEM, same block every step.
        return pl.BlockSpec(arr.shape, lambda i: (0, 0))

    in_specs = [
        pl.BlockSpec((tb, img_dim), lambda i: (i, 0)),     # batch-tiled image (f32)
        pl.BlockSpec((tb, k_lab), lambda i: (i, 0)),       # batch-tiled one-hot (bf16)
        resident(w1i_c), resident(w1l_c), resident(b1_c),
        resident(w2_c), resident(b2_c),
        resident(w3_c), resident(b3_c),
        resident(w4_c),
    ]
    out_spec = pl.BlockSpec((tb, OUT_W), lambda i: (i, 0))

    grid = (b_pad // tb,)

    # VMEM budget: double-buffered batch tiles + weights (+ headroom), clamped.
    weight_bytes = sum(int(x.size) * x.dtype.itemsize
                       for x in (w1i_c, w1l_c, w2_c, w3_c, w4_c, b1_c, b2_c, b3_c))
    tile_bytes = tb * img_dim * 4 + tb * k_lab * 2 + tb * OUT_W * 2
    vmem_limit = int(min(32 << 20, max(16 << 20,
                                       2 * weight_bytes + 2 * tile_bytes + (8 << 20))))

    flops = 2 * b_pad * hidden * (img_dim + k_lab + hidden + hidden + OUT_W)
    bytes_accessed = (sum(int(x.size) * x.dtype.itemsize for x in inputs)
                      + b_pad * OUT_W * 2)

    out_pad = pl.pallas_call(
        discriminator_kernel,
        out_shape=jax.ShapeDtypeStruct((b_pad, OUT_W), compute_dtype),  # bf16 writeback
        grid=grid,
        in_specs=in_specs,
        out_specs=out_spec,
        compiler_params=pltpu.CompilerParams(
            dimension_semantics=("parallel",),   # shard batch tiles across v7x TCs
            vmem_limit_bytes=vmem_limit,
        ),
        cost_estimate=pl.CostEstimate(
            flops=int(flops), transcendentals=0, bytes_accessed=int(bytes_accessed)),
    )(*inputs)

    # Slice the valid column/rows, upcast, and add the final bias (exact f32 add).
    return out_pad[:B, 0:1].astype(jnp.float32) + b4.reshape(1, 1).astype(jnp.float32)


# ----------------------------- references -----------------------------------

def reference_forward_f32(img, labels, params):
    """Exact module semantics, pure f32."""
    (emb_tbl, w1, b1, w2, b2, w3, b3, w4, b4) = params
    B = img.shape[0]
    x = img.reshape(B, -1).astype(jnp.float32)
    d_in = jnp.concatenate([x, emb_tbl[labels]], axis=-1)
    hp = jax.lax.Precision.HIGHEST
    leaky = lambda v: jnp.maximum(v, 0.2 * v)
    h = leaky(jnp.dot(d_in, w1, precision=hp) + b1)
    h = leaky(jnp.dot(h, w2, precision=hp) + b2)     # dropout identity (eval)
    h = leaky(jnp.dot(h, w3, precision=hp) + b3)     # dropout identity (eval)
    return jnp.dot(h, w4, precision=hp) + b4


def reference_forward_matched(img, labels, params, n_classes, dt=jnp.bfloat16):
    """Same dtype policy as the kernel (bf16 operands/epilogue, f32 MXU acc)."""
    (emb_tbl, w1, b1, w2, b2, w3, b3, w4, b4) = params
    B = img.shape[0]
    x = img.reshape(B, -1).astype(jnp.float32)
    img_dim = x.shape[1]
    hp = jax.lax.Precision.HIGHEST
    w1_img = w1[:img_dim, :].astype(dt)
    w1_lab = jnp.dot(emb_tbl.astype(jnp.float32), w1[img_dim:, :],
                     precision=hp).astype(dt)
    onehot = jax.nn.one_hot(labels, n_classes, dtype=dt)
    leaky = lambda v: jnp.maximum(v, 0.2 * v)

    acc = (jnp.dot(x.astype(dt), w1_img, preferred_element_type=jnp.float32)
           + jnp.dot(onehot, w1_lab, preferred_element_type=jnp.float32))
    h = leaky(acc.astype(dt) + b1.astype(dt))
    acc = jnp.dot(h, w2.astype(dt), preferred_element_type=jnp.float32)
    h = leaky(acc.astype(dt) + b2.astype(dt))
    acc = jnp.dot(h, w3.astype(dt), preferred_element_type=jnp.float32)
    h = leaky(acc.astype(dt) + b3.astype(dt))
    out = jnp.dot(h, w4.astype(dt), preferred_element_type=jnp.float32)
    return out.astype(dt).astype(jnp.float32) + b4.astype(jnp.float32)


def init_params(key, in_dim, n_classes, hidden):
    ks = jax.random.split(key, 9)
    scale = 0.02
    emb_tbl = jax.random.normal(ks[0], (n_classes, n_classes), jnp.float32) * scale
    w1 = jax.random.normal(ks[1], (in_dim, hidden), jnp.float32) * scale
    b1 = jax.random.normal(ks[2], (hidden,), jnp.float32) * scale
    w2 = jax.random.normal(ks[3], (hidden, hidden), jnp.float32) * scale
    b2 = jax.random.normal(ks[4], (hidden,), jnp.float32) * scale
    w3 = jax.random.normal(ks[5], (hidden, hidden), jnp.float32) * scale
    b3 = jax.random.normal(ks[6], (hidden,), jnp.float32) * scale
    w4 = jax.random.normal(ks[7], (hidden, 1), jnp.float32) * scale
    b4 = jax.random.normal(ks[8], (1,), jnp.float32) * scale
    return (emb_tbl, w1, b1, w2, b2, w3, b3, w4, b4)


def _check_case(B, C, S, n_classes, hidden, key):
    img_dim = C * S * S
    in_dim = img_dim + n_classes
    k_img, k_lab, k_par = jax.random.split(key, 3)
    img = jax.random.normal(k_img, (B, C, S, S), jnp.float32)           # NCHW
    labels = jax.random.randint(k_lab, (B,), 0, n_classes, jnp.int32)
    params = init_params(k_par, in_dim, n_classes, hidden)

    out = jax.block_until_ready(discriminator_forward(img, labels, params, n_classes))
    assert out.shape == (B, 1), out.shape

    # Tight check against a reference using the same bf16/f32 dtype policy.
    ref_m = jax.block_until_ready(
        reference_forward_matched(img, labels, params, n_classes))
    assert jnp.allclose(out, ref_m, atol=1e-3, rtol=1e-2), (out, ref_m)

    # Loose sanity check against the exact f32 module semantics
    # (bf16 matmul operands / epilogue introduce ~1%-level error).
    ref_f32 = jax.block_until_ready(reference_forward_f32(img, labels, params))
    assert jnp.allclose(out, ref_f32, atol=1e-2), (out, ref_f32)


if __name__ == "__main__":
    key = jax.random.PRNGKey(0)
    k1, k2 = jax.random.split(key)

    # Small, module-consistent shapes: channels=1, img_size=16, n_classes=10.
    _check_case(B=2, C=1, S=16, n_classes=10, hidden=512, key=k1)    # single tile
    _check_case(B=48, C=1, S=16, n_classes=10, hidden=512, key=k2)   # 2 tiles + row padding

    print("KERNEL_OK")
</pallas_src>

<mosaic_0001>
module attributes {stable_mosaic.version = 11 : i64} {
  func.func @discriminator_kernel(%arg0: i32, %arg1: memref<16x256xf32, #tpu.memory_space<vmem>>, %arg2: memref<16x128xbf16, #tpu.memory_space<vmem>>, %arg3: memref<256x512xbf16, #tpu.memory_space<vmem>>, %arg4: memref<128x512xbf16, #tpu.memory_space<vmem>>, %arg5: memref<1x512xbf16, #tpu.memory_space<vmem>>, %arg6: memref<512x512xbf16, #tpu.memory_space<vmem>>, %arg7: memref<1x512xbf16, #tpu.memory_space<vmem>>, %arg8: memref<512x512xbf16, #tpu.memory_space<vmem>>, %arg9: memref<1x512xbf16, #tpu.memory_space<vmem>>, %arg10: memref<512x128xbf16, #tpu.memory_space<vmem>>, %arg11: memref<16x128xbf16, #tpu.memory_space<vmem>>) attributes {dimension_semantics = [#tpu.dimension_semantics<parallel>], iteration_bounds = array<i64: 1>, scalar_prefetch = 0 : i64, scratch_operands = 0 : i64, tpu.core_type = #tpu.core_type<tc>, window_params = [{transform_indices = @transform_0, window_bounds = array<i64: 16, 256>}, {transform_indices = @transform_1, window_bounds = array<i64: 16, 128>}, {pipeline_mode = #tpu.pipeline_mode<synchronous>, transform_indices = @transform_2, window_bounds = array<i64: 256, 512>}, {pipeline_mode = #tpu.pipeline_mode<synchronous>, transform_indices = @transform_3, window_bounds = array<i64: 128, 512>}, {pipeline_mode = #tpu.pipeline_mode<synchronous>, transform_indices = @transform_4, window_bounds = array<i64: 1, 512>}, {pipeline_mode = #tpu.pipeline_mode<synchronous>, transform_indices = @transform_5, window_bounds = array<i64: 512, 512>}, {pipeline_mode = #tpu.pipeline_mode<synchronous>, transform_indices = @transform_6, window_bounds = array<i64: 1, 512>}, {pipeline_mode = #tpu.pipeline_mode<synchronous>, transform_indices = @transform_7, window_bounds = array<i64: 512, 512>}, {pipeline_mode = #tpu.pipeline_mode<synchronous>, transform_indices = @transform_8, window_bounds = array<i64: 1, 512>}, {pipeline_mode = #tpu.pipeline_mode<synchronous>, transform_indices = @transform_9, window_bounds = array<i64: 512, 128>}, {transform_indices = @transform_10, window_bounds = array<i64: 16, 128>}]} {
    %c0 = arith.constant 0 : index
    %c0_0 = arith.constant 0 : index
    %0 = vector.load %arg1[%c0, %c0_0] : memref<16x256xf32, #tpu.memory_space<vmem>>, vector<16x256xf32>
    %1 = arith.truncf %0 : vector<16x256xf32> to vector<16x256xbf16>
    %c0_1 = arith.constant 0 : index
    %c0_2 = arith.constant 0 : index
    %2 = vector.load %arg3[%c0_1, %c0_2] : memref<256x512xbf16, #tpu.memory_space<vmem>>, vector<256x512xbf16>
    %cst = arith.constant dense<0.000000e+00> : vector<16x512xf32>
    %3 = tpu.matmul %1, %2, %cst {dimension_numbers = #tpu.dot_dimension_numbers<[1], [0], [0], [1], [0, 0, 1, 1], [], []>} : vector<16x256xbf16>, vector<256x512xbf16>, vector<16x512xf32> -> vector<16x512xf32>
    %c0_3 = arith.constant 0 : index
    %c0_4 = arith.constant 0 : index
    %4 = vector.load %arg2[%c0_3, %c0_4] : memref<16x128xbf16, #tpu.memory_space<vmem>>, vector<16x128xbf16>
    %c0_5 = arith.constant 0 : index
    %c0_6 = arith.constant 0 : index
    %5 = vector.load %arg4[%c0_5, %c0_6] : memref<128x512xbf16, #tpu.memory_space<vmem>>, vector<128x512xbf16>
    %cst_7 = arith.constant dense<0.000000e+00> : vector<16x512xf32>
    %6 = tpu.matmul %4, %5, %cst_7 {dimension_numbers = #tpu.dot_dimension_numbers<[1], [0], [0], [1], [0, 0, 1, 1], [], []>} : vector<16x128xbf16>, vector<128x512xbf16>, vector<16x512xf32> -> vector<16x512xf32>
    %7 = arith.addf %3, %6 : vector<16x512xf32>
    %8 = arith.truncf %7 : vector<16x512xf32> to vector<16x512xbf16>
    %c0_8 = arith.constant 0 : index
    %c0_9 = arith.constant 0 : index
    %9 = vector.load %arg5[%c0_8, %c0_9] : memref<1x512xbf16, #tpu.memory_space<vmem>>, vector<1x512xbf16>
    %10 = vector.broadcast %9 : vector<1x512xbf16> to vector<16x512xbf16>
    %11 = arith.addf %8, %10 : vector<16x512xbf16>
    %cst_10 = arith.constant 2.001950e-01 : bf16
    %12 = vector.broadcast %cst_10 : bf16 to vector<16x512xbf16>
    %13 = arith.mulf %12, %11 : vector<16x512xbf16>
    %14 = arith.maximumf %11, %13 : vector<16x512xbf16>
    %c0_11 = arith.constant 0 : index
    %c0_12 = arith.constant 0 : index
    %15 = vector.load %arg6[%c0_11, %c0_12] : memref<512x512xbf16, #tpu.memory_space<vmem>>, vector<512x512xbf16>
    %cst_13 = arith.constant dense<0.000000e+00> : vector<16x512xf32>
    %16 = tpu.matmul %14, %15, %cst_13 {dimension_numbers = #tpu.dot_dimension_numbers<[1], [0], [0], [1], [0, 0, 1, 1], [], []>} : vector<16x512xbf16>, vector<512x512xbf16>, vector<16x512xf32> -> vector<16x512xf32>
    %17 = arith.truncf %16 : vector<16x512xf32> to vector<16x512xbf16>
    %c0_14 = arith.constant 0 : index
    %c0_15 = arith.constant 0 : index
    %18 = vector.load %arg7[%c0_14, %c0_15] : memref<1x512xbf16, #tpu.memory_space<vmem>>, vector<1x512xbf16>
    %19 = vector.broadcast %18 : vector<1x512xbf16> to vector<16x512xbf16>
    %20 = arith.addf %17, %19 : vector<16x512xbf16>
    %cst_16 = arith.constant 2.001950e-01 : bf16
    %21 = vector.broadcast %cst_16 : bf16 to vector<16x512xbf16>
    %22 = arith.mulf %21, %20 : vector<16x512xbf16>
    %23 = arith.maximumf %20, %22 : vector<16x512xbf16>
    %c0_17 = arith.constant 0 : index
    %c0_18 = arith.constant 0 : index
    %24 = vector.load %arg8[%c0_17, %c0_18] : memref<512x512xbf16, #tpu.memory_space<vmem>>, vector<512x512xbf16>
    %cst_19 = arith.constant dense<0.000000e+00> : vector<16x512xf32>
    %25 = tpu.matmul %23, %24, %cst_19 {dimension_numbers = #tpu.dot_dimension_numbers<[1], [0], [0], [1], [0, 0, 1, 1], [], []>} : vector<16x512xbf16>, vector<512x512xbf16>, vector<16x512xf32> -> vector<16x512xf32>
    %26 = arith.truncf %25 : vector<16x512xf32> to vector<16x512xbf16>
    %c0_20 = arith.constant 0 : index
    %c0_21 = arith.constant 0 : index
    %27 = vector.load %arg9[%c0_20, %c0_21] : memref<1x512xbf16, #tpu.memory_space<vmem>>, vector<1x512xbf16>
    %28 = vector.broadcast %27 : vector<1x512xbf16> to vector<16x512xbf16>
    %29 = arith.addf %26, %28 : vector<16x512xbf16>
    %cst_22 = arith.constant 2.001950e-01 : bf16
    %30 = vector.broadcast %cst_22 : bf16 to vector<16x512xbf16>
    %31 = arith.mulf %30, %29 : vector<16x512xbf16>
    %32 = arith.maximumf %29, %31 : vector<16x512xbf16>
    %c0_23 = arith.constant 0 : index
    %c0_24 = arith.constant 0 : index
    %33 = vector.load %arg10[%c0_23, %c0_24] : memref<512x128xbf16, #tpu.memory_space<vmem>>, vector<512x128xbf16>
    %cst_25 = arith.constant dense<0.000000e+00> : vector<16x128xf32>
    %34 = tpu.matmul %32, %33, %cst_25 {dimension_numbers = #tpu.dot_dimension_numbers<[1], [0], [0], [1], [0, 0, 1, 1], [], []>} : vector<16x512xbf16>, vector<512x128xbf16>, vector<16x128xf32> -> vector<16x128xf32>
    %35 = arith.truncf %34 : vector<16x128xf32> to vector<16x128xbf16>
    %c0_26 = arith.constant 0 : index
    %c0_27 = arith.constant 0 : index
    %36 = vector.load %arg11[%c0_26, %c0_27] : memref<16x128xbf16, #tpu.memory_space<vmem>>, vector<16x128xbf16>
    tpu.vector_store %arg11[%c0_26, %c0_27], %35 {strides = array<i32>} : memref<16x128xbf16, #tpu.memory_space<vmem>>, vector<16x128xbf16>,
    return
  }
  func.func @transform_0(%arg0: i32) -> (i32, i32) {
    %c0_i32 = arith.constant 0 : i32
    %c0_i32_0 = arith.constant 0 : i32
    return %arg0, %c0_i32 : i32, i32
  }
  func.func @transform_1(%arg0: i32) -> (i32, i32) {
    %c0_i32 = arith.constant 0 : i32
    %c0_i32_0 = arith.constant 0 : i32
    return %arg0, %c0_i32 : i32, i32
  }
  func.func @transform_2(%arg0: i32) -> (i32, i32) {
    %c0_i32 = arith.constant 0 : i32
    %c0_i32_0 = arith.constant 0 : i32
    %c0_i32_1 = arith.constant 0 : i32
    return %c0_i32, %c0_i32_0 : i32, i32
  }
  func.func @transform_3(%arg0: i32) -> (i32, i32) {
    %c0_i32 = arith.constant 0 : i32
    %c0_i32_0 = arith.constant 0 : i32
    %c0_i32_1 = arith.constant 0 : i32
    return %c0_i32, %c0_i32_0 : i32, i32
  }
  func.func @transform_4(%arg0: i32) -> (i32, i32) {
    %c0_i32 = arith.constant 0 : i32
    %c0_i32_0 = arith.constant 0 : i32
    %c0_i32_1 = arith.constant 0 : i32
    return %c0_i32, %c0_i32_0 : i32, i32
  }
  func.func @transform_5(%arg0: i32) -> (i32, i32) {
    %c0_i32 = arith.constant 0 : i32
    %c0_i32_0 = arith.constant 0 : i32
    %c0_i32_1 = arith.constant 0 : i32
    return %c0_i32, %c0_i32_0 : i32, i32
  }
  func.func @transform_6(%arg0: i32) -> (i32, i32) {
    %c0_i32 = arith.constant 0 : i32
    %c0_i32_0 = arith.constant 0 : i32
    %c0_i32_1 = arith.constant 0 : i32
    return %c0_i32, %c0_i32_0 : i32, i32
  }
  func.func @transform_7(%arg0: i32) -> (i32, i32) {
    %c0_i32 = arith.constant 0 : i32
    %c0_i32_0 = arith.constant 0 : i32
    %c0_i32_1 = arith.constant 0 : i32
    return %c0_i32, %c0_i32_0 : i32, i32
  }
  func.func @transform_8(%arg0: i32) -> (i32, i32) {
    %c0_i32 = arith.constant 0 : i32
    %c0_i32_0 = arith.constant 0 : i32
    %c0_i32_1 = arith.constant 0 : i32
    return %c0_i32, %c0_i32_0 : i32, i32
  }
  func.func @transform_9(%arg0: i32) -> (i32, i32) {
    %c0_i32 = arith.constant 0 : i32
    %c0_i32_0 = arith.constant 0 : i32
    %c0_i32_1 = arith.constant 0 : i32
    return %c0_i32, %c0_i32_0 : i32, i32
  }
  func.func @transform_10(%arg0: i32) -> (i32, i32) {
    %c0_i32 = arith.constant 0 : i32
    %c0_i32_0 = arith.constant 0 : i32
    return %arg0, %c0_i32 : i32, i32
  }
}

</mosaic_0001>

<bundles_post_ra>
// kernel: tpu_custom_call.1
= control target key start
LH: loop header
LB: loop body
LE: loop exit
PB: predicated region body
PF: predicated region fallthrough
CT: control target
= control target key end

     0   :  { %15 = vsyncpa [#allocation3], 0  ;;  %s4829_s0 = inlined_call_operand.hbm [shape: f32[16,256], index: 0, kind: input, shape index: {}]   ;;  %s4830_s1 = inlined_call_operand.hbm [shape: bf16[16,128], index: 1, kind: input, shape index: {}]   ;;  %s4831_s2 = inlined_call_operand.hbm [shape: bf16[256,512], index: 2, kind: input, shape index: {}]   ;;  %s4832_s3 = inlined_call_operand.hbm [shape: bf16[128,512], index: 3, kind: input, shape index: {}]   ;;  %s4833_s4 = inlined_call_operand.vmem [shape: bf16[1,512], index: 4, kind: input, shape index: {}]   ;;  %s4834_s5 = inlined_call_operand.hbm [shape: bf16[512,512], index: 5, kind: input, shape index: {}]   ;;  %s4835_s6 = inlined_call_operand.vmem [shape: bf16[1,512], index: 6, kind: input, shape index: {}]   ;;  %s4836_s7 = inlined_call_operand.hbm [shape: bf16[512,512], index: 7, kind: input, shape index: {}]   ;;  %s4837_s8 = inlined_call_operand.vmem [shape: bf16[1,512], index: 8, kind: input, shape index: {}]   ;;  %s4838_s9 = inlined_call_operand.hbm [shape: bf16[512,128], index: 9, kind: input, shape index: {}]   ;;  %s4839_s10 = inlined_call_operand.hbm [shape: bf16[16,128], index: 10, kind: output, shape index: {}]  }
   0x1   :  { %16 = vsyncpa [#allocation6], 0 }
   0x2   :  { %17 = vsyncpa [#allocation9], 0 }
   0x3   :  { %18 = vsyncpa [#allocation12], 0 }
   0x4   :  { %19 = vsyncpa [#allocation4], 0  ;;  %s4579_s13 = smov [#allocation5]   ;;  %s4393_s17 = scalar_lea.hbm %s4830_s1, 128 }
   0x5   :  { %s37_s14 = sshll.u32 %s4579_s13, 4  ;;  %p4394_p0 = scmp.ne.s32.totalorder %s4830_s1, %s4393_s17  ;;  %s38_s14 = int_to_ptr.vmem [resolvable:$true] %s37_s14 }
   0x6   :  { %p4397_p1 = scmp.lt.u32.totalorder %s4393_s17, %s4830_s1 }
   0x8   :  { %p4399_p2 = pnand %p4397_p1, %p4394_p0 }
   0xa   :  { %4402 = shalt.err (!%p4399_p2)
}
   0xb   :  { %s4403_s22 = scalar_lea.vmem %s38_s14, 128  ;;  %p4408_p4 = scmp.lt.s32.totalorder %s38_s14, %s38_s14 }
   0xc   :  { %p4404_p3 = scmp.ne.s32.totalorder %s38_s14, %s4403_s22  ;;  %p4409_p5 = scmp.lt.s32.totalorder %s4403_s22, %s4403_s22 }
   0xe   :  { %p4410_p6 = por %p4409_p5, %p4408_p4 }
  0x10   :  { %p4411_p7 = pnand %p4410_p6, %p4404_p3 }
  0x12   :  { %4414 = shalt.err (!%p4411_p7)
}
  0x13   :  { %s4580_s23 = smov 64   ;;  %s4581_s24 = smov 4  }
  0x14   :  { %43 = dma.hbm_to_vmem [thread:$0]  %s4830_s1, 128, %s38_s14, [#allocation6], %s4580_s23, %s4580_s23, %s4581_s24  }
  0x15   :  { %s4582_s27 = smov [#allocation8]   ;;  %s4583_s29 = smov [#allocation11]  }
  0x16   :  { %s61_s28 = sshll.u32 %s4582_s27, 4  ;;  %s89_s30 = sshll.u32 %s4583_s29, 4  ;;  %s62_s28 = int_to_ptr.vmem [resolvable:$true] %s61_s28  ;;  %s90_s30 = int_to_ptr.vmem [resolvable:$true] %s89_s30 }
  0x17   :  { %s4415_s13 = scalar_lea.hbm %s4832_s3, 4096 }
  0x18   :  { %p4416_p8 = scmp.ne.s32.totalorder %s4832_s3, %s4415_s13  ;;  %p4419_p9 = scmp.lt.u32.totalorder %s4415_s13, %s4832_s3 }
  0x1a   :  { %p4421_p10 = pnand %p4419_p9, %p4416_p8 }
  0x1c   :  { %4424 = shalt.err (!%p4421_p10)
}
  0x1d   :  { %s4425_s1 = scalar_lea.vmem %s62_s28, 4096  ;;  %p4430_p12 = scmp.lt.s32.totalorder %s62_s28, %s62_s28 }
  0x1e   :  { %p4426_p11 = scmp.ne.s32.totalorder %s62_s28, %s4425_s1  ;;  %p4431_p13 = scmp.lt.s32.totalorder %s4425_s1, %s4425_s1 }
  0x20   :  { %p4432_p0 = por %p4431_p13, %p4430_p12 }
  0x22   :  { %p4433_p1 = pnand %p4432_p0, %p4426_p11 }
  0x24   :  { %4436 = shalt.err (!%p4433_p1)
}
  0x25   :  { %s4584_s14 = smov 256   ;;  %s4585_s19 = smov 16  }
  0x26   :  { %67 = dma.hbm_to_vmem [thread:$0]  %s4832_s3, 4096, %s62_s28, [#allocation9], %s4584_s14, %s4584_s14, %s4585_s19  }
  0x27   :  { %s4437_s26 = scalar_lea.hbm %s4836_s7, 16384 }
  0x28   :  { %p4438_p2 = scmp.ne.s32.totalorder %s4836_s7, %s4437_s26  ;;  %p4441_p3 = scmp.lt.u32.totalorder %s4437_s26, %s4836_s7 }
  0x2a   :  { %p4443_p4 = pnand %p4441_p3, %p4438_p2 }
  0x2c   :  { %4446 = shalt.err (!%p4443_p4)
}
  0x2d   :  { %s4447_s13 = scalar_lea.vmem %s90_s30, 16384  ;;  %p4452_p6 = scmp.lt.s32.totalorder %s90_s30, %s90_s30 }
  0x2e   :  { %p4448_p5 = scmp.ne.s32.totalorder %s90_s30, %s4447_s13  ;;  %p4453_p7 = scmp.lt.s32.totalorder %s4447_s13, %s4447_s13 }
  0x30   :  { %p4454_p8 = por %p4453_p7, %p4452_p6 }
  0x32   :  { %p4455_p9 = pnand %p4454_p8, %p4448_p5 }
  0x34   :  { %4458 = shalt.err (!%p4455_p9)
}
  0x35   :  { %95 = dma.hbm_to_vmem [thread:$0]  %s4836_s7, 16384, %s90_s30, [#allocation12], %s4584_s14, %s4584_s14, %s4585_s19  }
  0x36   :  { %s4586_s15 = smov [#allocation2]   ;;  %s4587_s17 = smov [#allocation7]  }
  0x37   :  { %s25_s16 = sshll.u32 %s4586_s15, 4  ;;  %s49_s18 = sshll.u32 %s4587_s17, 4  ;;  %s26_s16 = int_to_ptr.vmem [resolvable:$true] %s25_s16  ;;  %s50_s18 = int_to_ptr.vmem [resolvable:$true] %s49_s18 }
  0x38   :  { %s4459_s21 = scalar_lea.hbm %s4829_s0, 512 }
  0x39   :  { %p4460_p10 = scmp.ne.s32.totalorder %s4829_s0, %s4459_s21  ;;  %p4463_p11 = scmp.lt.u32.totalorder %s4459_s21, %s4829_s0 }
  0x3b   :  { %p4465_p12 = pnand %p4463_p11, %p4460_p10 }
  0x3d   :  { %4468 = shalt.err (!%p4465_p12)
}
  0x3e   :  { %s4469_s7 = scalar_lea.vmem %s26_s16, 512  ;;  %p4474_p0 = scmp.lt.s32.totalorder %s26_s16, %s26_s16 }
  0x3f   :  { %p4470_p13 = scmp.ne.s32.totalorder %s26_s16, %s4469_s7  ;;  %p4475_p1 = scmp.lt.s32.totalorder %s4469_s7, %s4469_s7 }
  0x41   :  { %p4476_p2 = por %p4475_p1, %p4474_p0 }
  0x43   :  { %p4477_p3 = pnand %p4476_p2, %p4470_p13 }
  0x45   :  { %4480 = shalt.err (!%p4477_p3)
}
  0x46   :  { %31 = dma.hbm_to_vmem [thread:$0]  %s4829_s0, 512, %s26_s16, [#allocation3], %s4584_s14, %s4584_s14, %s4585_s19  }
  0x47   :  { %s4481_s13 = scalar_lea.hbm %s4831_s2, 8192 }
  0x48   :  { %p4482_p4 = scmp.ne.s32.totalorder %s4831_s2, %s4481_s13  ;;  %p4485_p5 = scmp.lt.u32.totalorder %s4481_s13, %s4831_s2 }
  0x4a   :  { %p4487_p6 = pnand %p4485_p5, %p4482_p4 }
  0x4c   :  { %4490 = shalt.err (!%p4487_p6)
}
  0x4d   :  { %s4491_s1 = scalar_lea.vmem %s50_s18, 8192  ;;  %p4496_p8 = scmp.lt.s32.totalorder %s50_s18, %s50_s18 }
  0x4e   :  { %p4492_p7 = scmp.ne.s32.totalorder %s50_s18, %s4491_s1  ;;  %p4497_p9 = scmp.lt.s32.totalorder %s4491_s1, %s4491_s1 }
  0x50   :  { %p4498_p10 = por %p4497_p9, %p4496_p8 }
  0x52   :  { %p4499_p11 = pnand %p4498_p10, %p4492_p7 }
  0x54   :  { %4502 = shalt.err (!%p4499_p11)
}
  0x55   :  { %55 = dma.hbm_to_vmem [thread:$0]  %s4831_s2, 8192, %s50_s18, [#allocation6], %s4584_s14, %s4584_s14, %s4585_s19  }
  0x56   :  { %s4588_s20 = smov [#allocation10]   ;;  %s4589_s22 = smov [#allocation13]  }
  0x57   :  { %s75_s21 = sshll.u32 %s4588_s20, 4  ;;  %s103_s25 = sshll.u32 %s4589_s22, 4  ;;  %s76_s21 = int_to_ptr.vmem [resolvable:$true] %s75_s21  ;;  %s104_s25 = int_to_ptr.vmem [resolvable:$true] %s103_s25 }
  0x58   :  { %s4503_s7 = scalar_lea.hbm %s4834_s5, 16384 }
  0x59   :  { %p4504_p12 = scmp.ne.s32.totalorder %s4834_s5, %s4503_s7  ;;  %p4507_p13 = scmp.lt.u32.totalorder %s4503_s7, %s4834_s5 }
  0x5b   :  { %p4509_p0 = pnand %p4507_p13, %p4504_p12 }
  0x5d   :  { %4512 = shalt.err (!%p4509_p0)
}
  0x5e   :  { %s4513_s2 = scalar_lea.vmem %s76_s21, 16384  ;;  %p4518_p2 = scmp.lt.s32.totalorder %s76_s21, %s76_s21 }
  0x5f   :  { %p4514_p1 = scmp.ne.s32.totalorder %s76_s21, %s4513_s2  ;;  %p4519_p3 = scmp.lt.s32.totalorder %s4513_s2, %s4513_s2 }
  0x61   :  { %p4520_p4 = por %p4519_p3, %p4518_p2 }
  0x63   :  { %p4521_p5 = pnand %p4520_p4, %p4514_p1 }
  0x65   :  { %4524 = shalt.err (!%p4521_p5)
}
  0x66   :  { %81 = dma.hbm_to_vmem [thread:$0]  %s4834_s5, 16384, %s76_s21, [#allocation9], %s4584_s14, %s4584_s14, %s4585_s19  }
  0x67   :  { %s4525_s15 = scalar_lea.hbm %s4838_s9, 4096 }
  0x68   :  { %p4526_p6 = scmp.ne.s32.totalorder %s4838_s9, %s4525_s15  ;;  %p4529_p7 = scmp.lt.u32.totalorder %s4525_s15, %s4838_s9 }
  0x6a   :  { %p4531_p8 = pnand %p4529_p7, %p4526_p6 }
  0x6c   :  { %4534 = shalt.err (!%p4531_p8)
}
  0x6d   :  { %s4535_s20 = scalar_lea.vmem %s104_s25, 4096  ;;  %p4540_p10 = scmp.lt.s32.totalorder %s104_s25, %s104_s25 }
  0x6e   :  { %p4536_p9 = scmp.ne.s32.totalorder %s104_s25, %s4535_s20  ;;  %p4541_p11 = scmp.lt.s32.totalorder %s4535_s20, %s4535_s20 }
  0x70   :  { %p4542_p12 = por %p4541_p11, %p4540_p10 }
  0x72   :  { %p4543_p13 = pnand %p4542_p12, %p4536_p9 }
  0x74   :  { %4546 = shalt.err (!%p4543_p13)
}
  0x75   :  { %109 = dma.hbm_to_vmem [thread:$0]  %s4838_s9, 4096, %s104_s25, [#allocation12], %s4580_s23, %s4580_s23, %s4581_s24  }
  0x76   :  { %4569 = dma.done.wait [#allocation3], 512  }
  0x77   :  { %4570 = vsyncadd [#allocation3], 4294966784 }
  0x78   :  { %4571 = dma.done.wait [#allocation6], 8320  }
  0x79   :  { %4572 = vsyncadd [#allocation6], 4294958976 }
  0x7a   :  { %4573 = dma.done.wait [#allocation9], 20480  }
  0x7b   :  { %4574 = vsyncadd [#allocation9], 4294946816 }
  0x7c   :  { %4575 = dma.done.wait [#allocation12], 20480  }
  0x7d   :  { %4576 = vsyncadd [#allocation12], 4294946816  ;;  %v4590_v0 = vmov 0   ;;  %v3832_v1 = vld [vmem:[#allocation8 + $0x4] ss:$16 sps:$4 sm:$0xff]   ;;  %v3886_v36 = vld [vmem:[#allocation5] sm:$0xff]  }
  0x7e   :  { %435 = vmatprep.mubr.bf16.mxu0 %v4590_v0  ;;  %478 = vmatprep.mubr.bf16.mxu1 %v4590_v0  ;;  %v3834_v2 = vld [vmem:[#allocation8 + $0xc] ss:$16 sps:$4 sm:$0xff]   ;;  %v3836_v3 = vld [vmem:[#allocation8] ss:$16 sps:$4 sm:$0xff]   ;;  %v3837_v4 = vld [vmem:[#allocation8 + $0x8] ss:$16 sps:$4 sm:$0xff]  }
  0x7f   :  { %403 = vmatprep.subr.bf16.mxu0 %v3832_v1  ;;  %446 = vmatprep.subr.bf16.mxu1 %v3834_v2  ;;  %v3838_v5 = vld [vmem:[#allocation8 + $0x24] ss:$16 sps:$4 sm:$0xff]   ;;  %v3840_v6 = vld [vmem:[#allocation8 + $0x2c] ss:$16 sps:$4 sm:$0xff]   ;;  %v3842_v7 = vld [vmem:[#allocation8 + $0x20] ss:$16 sps:$4 sm:$0xff]  }
  0x80   :  { %404 = vmatpush1.bf16.msra.mxu0 %v3836_v3  ;;  %447 = vmatpush1.bf16.msra.mxu1 %v3837_v4  ;;  %v3843_v8 = vld [vmem:[#allocation8 + $0x28] ss:$16 sps:$4 sm:$0xff]   ;;  %v3844_v9 = vld [vmem:[#allocation8 + $0x44] ss:$16 sps:$4 sm:$0xff]   ;;  %v3846_v10 = vld [vmem:[#allocation8 + $0x4c] ss:$16 sps:$4 sm:$0xff]  }
  0x81   :  { %405 = vmatprep.subr.bf16.mxu0 %v3838_v5  ;;  %448 = vmatprep.subr.bf16.mxu1 %v3840_v6  ;;  %v3848_v11 = vld [vmem:[#allocation8 + $0x40] ss:$16 sps:$4 sm:$0xff]   ;;  %v3849_v12 = vld [vmem:[#allocation8 + $0x48] ss:$16 sps:$4 sm:$0xff]   ;;  %v3850_v13 = vld [vmem:[#allocation8 + $0x64] ss:$16 sps:$4 sm:$0xff]  }
  0x82   :  { %v3852_v14 = vld [vmem:[#allocation8 + $0x6c] ss:$16 sps:$4 sm:$0xff]   ;;  %v3854_v15 = vld [vmem:[#allocation8 + $0x60] ss:$16 sps:$4 sm:$0xff]   ;;  %v3855_v16 = vld [vmem:[#allocation8 + $0x68] ss:$16 sps:$4 sm:$0xff]  }
  0x83   :  { %v3856_v17 = vld [vmem:[#allocation8 + $0x84] ss:$16 sps:$4 sm:$0xff]   ;;  %v3858_v18 = vld [vmem:[#allocation8 + $0x8c] ss:$16 sps:$4 sm:$0xff]   ;;  %v3860_v19 = vld [vmem:[#allocation8 + $0x80] ss:$16 sps:$4 sm:$0xff]  }
  0x84   :  { %406 = vmatpush1.bf16.msra.mxu0 %v3842_v7  ;;  %449 = vmatpush1.bf16.msra.mxu1 %v3843_v8  ;;  %v3861_v20 = vld [vmem:[#allocation8 + $0x88] ss:$16 sps:$4 sm:$0xff]   ;;  %v3862_v21 = vld [vmem:[#allocation8 + $0xa4] ss:$16 sps:$4 sm:$0xff]   ;;  %v3864_v22 = vld [vmem:[#allocation8 + $0xac] ss:$16 sps:$4 sm:$0xff]  }
  0x85   :  { %407 = vmatprep.subr.bf16.mxu0 %v3844_v9  ;;  %450 = vmatprep.subr.bf16.mxu1 %v3846_v10  ;;  %v3866_v23 = vld [vmem:[#allocation8 + $0xa0] ss:$16 sps:$4 sm:$0xff]   ;;  %v3867_v24 = vld [vmem:[#allocation8 + $0xa8] ss:$16 sps:$4 sm:$0xff]   ;;  %v3868_v25 = vld [vmem:[#allocation8 + $0xc4] ss:$16 sps:$4 sm:$0xff]  }
  0x86   :  { %v3870_v26 = vld [vmem:[#allocation8 + $0xcc] ss:$16 sps:$4 sm:$0xff]   ;;  %v3872_v27 = vld [vmem:[#allocation8 + $0xc0] ss:$16 sps:$4 sm:$0xff]   ;;  %v3873_v28 = vld [vmem:[#allocation8 + $0xc8] ss:$16 sps:$4 sm:$0xff]  }
  0x87   :  { %v3874_v29 = vld [vmem:[#allocation8 + $0xe4] ss:$16 sps:$4 sm:$0xff]   ;;  %v3876_v30 = vld [vmem:[#allocation8 + $0xec] ss:$16 sps:$4 sm:$0xff]   ;;  %v3878_v31 = vld [vmem:[#allocation8 + $0xe0] ss:$16 sps:$4 sm:$0xff]  }
  0x88   :  { %408 = vmatpush1.bf16.msra.mxu0 %v3848_v11  ;;  %451 = vmatpush1.bf16.msra.mxu1 %v3849_v12  ;;  %v3879_v32 = vld [vmem:[#allocation8 + $0xe8] ss:$16 sps:$4 sm:$0xff]   ;;  %v3882_v33 = vld [vmem:[#allocation7 + $0x4] ss:$16 sps:$4 sm:$0xff]   ;;  %v3885_v34 = vld [vmem:[#allocation7 + $0xc] ss:$16 sps:$4 sm:$0xff]  }
  0x89   :  { %409 = vmatprep.subr.bf16.mxu0 %v3850_v13  ;;  %452 = vmatprep.subr.bf16.mxu1 %v3852_v14  ;;  %v3880_v35 = vld [vmem:[#allocation7] ss:$16 sps:$4 sm:$0xff]   ;;  %v3883_v37 = vld [vmem:[#allocation7 + $0x8] ss:$16 sps:$4 sm:$0xff]   ;;  %v3889_v38 = vld [vmem:[#allocation7 + $0x24] ss:$16 sps:$4 sm:$0xff]  }
  0x8a   :  { %v3892_v39 = vld [vmem:[#allocation7 + $0x2c] ss:$16 sps:$4 sm:$0xff]   ;;  %v3887_v40 = vld [vmem:[#allocation7 + $0x20] ss:$16 sps:$4 sm:$0xff]   ;;  %v3890_v41 = vld [vmem:[#allocation7 + $0x28] ss:$16 sps:$4 sm:$0xff]  }
  0x8b   :  { %v3895_v42 = vld [vmem:[#allocation7 + $0x44] ss:$16 sps:$4 sm:$0xff]   ;;  %v3898_v43 = vld [vmem:[#allocation7 + $0x4c] ss:$16 sps:$4 sm:$0xff]   ;;  %v3893_v44 = vld [vmem:[#allocation7 + $0x40] ss:$16 sps:$4 sm:$0xff]  }
  0x8c   :  { %410 = vmatpush1.bf16.msra.mxu0 %v3854_v15  ;;  %453 = vmatpush1.bf16.msra.mxu1 %v3855_v16  ;;  %v3896_v45 = vld [vmem:[#allocation7 + $0x48] ss:$16 sps:$4 sm:$0xff]   ;;  %v3901_v46 = vld [vmem:[#allocation7 + $0x64] ss:$16 sps:$4 sm:$0xff]   ;;  %v3904_v47 = vld [vmem:[#allocation7 + $0x6c] ss:$16 sps:$4 sm:$0xff]  }
  0x8d   :  { %411 = vmatprep.subr.bf16.mxu0 %v3856_v17  ;;  %454 = vmatprep.subr.bf16.mxu1 %v3858_v18  ;;  %v3899_v48 = vld [vmem:[#allocation7 + $0x60] ss:$16 sps:$4 sm:$0xff]   ;;  %v3902_v49 = vld [vmem:[#allocation7 + $0x68] ss:$16 sps:$4 sm:$0xff]   ;;  %v3907_v50 = vld [vmem:[#allocation7 + $0x84] ss:$16 sps:$4 sm:$0xff]  }
  0x8e   :  { %v3910_v51 = vld [vmem:[#allocation7 + $0x8c] ss:$16 sps:$4 sm:$0xff]   ;;  %v3905_v52 = vld [vmem:[#allocation7 + $0x80] ss:$16 sps:$4 sm:$0xff]   ;;  %v3908_v53 = vld [vmem:[#allocation7 + $0x88] ss:$16 sps:$4 sm:$0xff]  }
  0x8f   :  { %v3913_v54 = vld [vmem:[#allocation7 + $0xa4] ss:$16 sps:$4 sm:$0xff]   ;;  %v3916_v55 = vld [vmem:[#allocation7 + $0xac] ss:$16 sps:$4 sm:$0xff]   ;;  %v3911_v56 = vld [vmem:[#allocation7 + $0xa0] ss:$16 sps:$4 sm:$0xff]  }
  0x90   :  { %412 = vmatpush1.bf16.msra.mxu0 %v3860_v19  ;;  %455 = vmatpush1.bf16.msra.mxu1 %v3861_v20  ;;  %v3914_v57 = vld [vmem:[#allocation7 + $0xa8] ss:$16 sps:$4 sm:$0xff]   ;;  %v3919_v58 = vld [vmem:[#allocation7 + $0xc4] ss:$16 sps:$4 sm:$0xff]   ;;  %v3922_v59 = vld [vmem:[#allocation7 + $0xcc] ss:$16 sps:$4 sm:$0xff]  }
  0x91   :  { %413 = vmatprep.subr.bf16.mxu0 %v3862_v21  ;;  %456 = vmatprep.subr.bf16.mxu1 %v3864_v22  ;;  %v3917_v60 = vld [vmem:[#allocation7 + $0xc0] ss:$16 sps:$4 sm:$0xff]   ;;  %v3920_v61 = vld [vmem:[#allocation7 + $0xc8] ss:$16 sps:$4 sm:$0xff]   ;;  %v3925_v62 = vld [vmem:[#allocation7 + $0xe4] ss:$16 sps:$4 sm:$0xff]  }
  0x92   :  { %v3928_v63 = vld [vmem:[#allocation7 + $0xec] ss:$16 sps:$4 sm:$0xff]   ;;  %v3923_v0 = vld [vmem:[#allocation7 + $0xe0] ss:$16 sps:$4 sm:$0xff]   ;;  %v3926_v1 = vld [vmem:[#allocation7 + $0xe8] ss:$16 sps:$4 sm:$0xff]  }
  0x93   :  { %v3931_v2 = vld [vmem:[#allocation7 + $0x104] ss:$16 sps:$4 sm:$0xff]   ;;  %v3934_v3 = vld [vmem:[#allocation7 + $0x10c] ss:$16 sps:$4 sm:$0xff]   ;;  %v3929_v4 = vld [vmem:[#allocation7 + $0x100] ss:$16 sps:$4 sm:$0xff]  }
  0x94   :  { %414 = vmatpush1.bf16.msra.mxu0 %v3866_v23  ;;  %457 = vmatpush1.bf16.msra.mxu1 %v3867_v24  ;;  %v3932_v5 = vld [vmem:[#allocation7 + $0x108] ss:$16 sps:$4 sm:$0xff]   ;;  %v3937_v6 = vld [vmem:[#allocation7 + $0x124] ss:$16 sps:$4 sm:$0xff]   ;;  %v3940_v7 = vld [vmem:[#allocation7 + $0x12c] ss:$16 sps:$4 sm:$0xff]  }
  0x95   :  { %415 = vmatprep.subr.bf16.mxu0 %v3868_v25  ;;  %458 = vmatprep.subr.bf16.mxu1 %v3870_v26  ;;  %v134_v8 = vld [vmem:[#allocation2 + $0x8] sm:$0xff]  ;;  %v136_v9 = vld [vmem:[#allocation2 + $0x18] sm:$0xff]  ;;  %v3938_v12 = vld [vmem:[#allocation7 + $0x128] ss:$16 sps:$4 sm:$0xff]  }
  0x96   :  { %v138_v10 = vpack.c.bf16 %v136_v9, %v134_v8  ;;  %v3935_v11 = vld [vmem:[#allocation7 + $0x120] ss:$16 sps:$4 sm:$0xff]   ;;  %v3943_v13 = vld [vmem:[#allocation7 + $0x144] ss:$16 sps:$4 sm:$0xff]   ;;  %v3946_v14 = vld [vmem:[#allocation7 + $0x14c] ss:$16 sps:$4 sm:$0xff]  }
  0x97   :  { %v3941_v15 = vld [vmem:[#allocation7 + $0x140] ss:$16 sps:$4 sm:$0xff]   ;;  %v3944_v16 = vld [vmem:[#allocation7 + $0x148] ss:$16 sps:$4 sm:$0xff]   ;;  %v3949_v17 = vld [vmem:[#allocation7 + $0x164] ss:$16 sps:$4 sm:$0xff]  }
  0x98   :  { %416 = vmatpush1.bf16.msra.mxu0 %v3872_v27  ;;  %459 = vmatpush1.bf16.msra.mxu1 %v3873_v28  ;;  %v3952_v18 = vld [vmem:[#allocation7 + $0x16c] ss:$16 sps:$4 sm:$0xff]   ;;  %v3947_v19 = vld [vmem:[#allocation7 + $0x160] ss:$16 sps:$4 sm:$0xff]   ;;  %v3950_v20 = vld [vmem:[#allocation7 + $0x168] ss:$16 sps:$4 sm:$0xff]  }
  0x99   :  { %417 = vmatprep.subr.bf16.mxu0 %v3874_v29  ;;  %460 = vmatprep.subr.bf16.mxu1 %v3876_v30  ;;  %v3955_v21 = vld [vmem:[#allocation7 + $0x184] ss:$16 sps:$4 sm:$0xff]   ;;  %v3958_v22 = vld [vmem:[#allocation7 + $0x18c] ss:$16 sps:$4 sm:$0xff]   ;;  %v3953_v23 = vld [vmem:[#allocation7 + $0x180] ss:$16 sps:$4 sm:$0xff]  }
  0x9a   :  { %v3956_v24 = vld [vmem:[#allocation7 + $0x188] ss:$16 sps:$4 sm:$0xff]   ;;  %v3961_v25 = vld [vmem:[#allocation7 + $0x1a4] ss:$16 sps:$4 sm:$0xff]   ;;  %v3964_v26 = vld [vmem:[#allocation7 + $0x1ac] ss:$16 sps:$4 sm:$0xff]  }
  0x9b   :  { %v3959_v27 = vld [vmem:[#allocation7 + $0x1a0] ss:$16 sps:$4 sm:$0xff]   ;;  %v3962_v28 = vld [vmem:[#allocation7 + $0x1a8] ss:$16 sps:$4 sm:$0xff]   ;;  %v3967_v29 = vld [vmem:[#allocation7 + $0x1c4] ss:$16 sps:$4 sm:$0xff]  }
  0x9c   :  { %418 = vmatpush1.bf16.msra.mxu0 %v3878_v31  ;;  %461 = vmatpush1.bf16.msra.mxu1 %v3879_v32  ;;  %v3970_v30 = vld [vmem:[#allocation7 + $0x1cc] ss:$16 sps:$4 sm:$0xff]   ;;  %v3965_v31 = vld [vmem:[#allocation7 + $0x1c0] ss:$16 sps:$4 sm:$0xff]   ;;  %v3968_v32 = vld [vmem:[#allocation7 + $0x1c8] ss:$16 sps:$4 sm:$0xff]  }
  0x9d   :  { %809 = vmatprep.subr.bf16.mxu0 %v3882_v33  ;;  %852 = vmatprep.subr.bf16.mxu1 %v3885_v34  ;;  %v3973_v33 = vld [vmem:[#allocation7 + $0x1e4] ss:$16 sps:$4 sm:$0xff]   ;;  %v3976_v34 = vld [vmem:[#allocation7 + $0x1ec] ss:$16 sps:$4 sm:$0xff]  }
  0x9e   :  { %v4027_v8 = vld [vmem:[#allocation10 + $0x104] ss:$16 sps:$4 sm:$0xff]   ;;  %v4030_v9 = vld [vmem:[#allocation10 + $0x10c] ss:$16 sps:$4 sm:$0xff]  }
  0x9f   :  { %436 = vmatmul.mubr.bf16.vlgmr.msra.gmra.mrb[0].mxu0 %v3886_v36  ;;  %479 = vmatmul.mubr.bf16.vlgmr.msra.gmra.mrb[0].mxu1 %v3886_v36  ;;  %v3974_v36 = vld [vmem:[#allocation7 + $0x1e8] ss:$16 sps:$4 sm:$0xff]  }
  0xa0   :  { %810 = vmatpush1.bf16.msra.mxu0 %v3880_v35  ;;  %853 = vmatpush1.bf16.msra.mxu1 %v3883_v37  ;;  %v3971_v35 = vld [vmem:[#allocation7 + $0x1e0] ss:$16 sps:$4 sm:$0xff]   ;;  %v133_v37 = vld [vmem:[#allocation2] sm:$0xff] }
  0xa1   :  { %811 = vmatprep.subr.bf16.mxu0 %v3889_v38  ;;  %854 = vmatprep.subr.bf16.mxu1 %v3892_v39  ;;  %v135_v38 = vld [vmem:[#allocation2 + $0x10] sm:$0xff]  ;;  %v3979_v39 = vld [vmem:[#allocation10 + $0x4] ss:$16 sps:$4 sm:$0xff]  }
  0xa2   :  { %841 = vmatprep.mubr.bf16.mxu0 %v138_v10  ;;  %884 = vmatprep.mubr.bf16.mxu1 %v138_v10  ;;  %v4025_v10 = vld [vmem:[#allocation10 + $0x100] ss:$16 sps:$4 sm:$0xff]  }
  0xa4   :  { %812 = vmatpush1.bf16.msra.mxu0 %v3887_v40  ;;  %855 = vmatpush1.bf16.msra.mxu1 %v3890_v41  ;;  %v3982_v40 = vld [vmem:[#allocation10 + $0xc] ss:$16 sps:$4 sm:$0xff]   ;;  %v137_v41 = vpack.c.bf16 %v135_v38, %v133_v37  ;;  %v4067_v38 = vld [vmem:[#allocation10 + $0x1e0] ss:$16 sps:$4 sm:$0xff]  }
  0xa5   :  { %813 = vmatprep.subr.bf16.mxu0 %v3895_v42  ;;  %856 = vmatprep.subr.bf16.mxu1 %v3898_v43  ;;  %v3977_v42 = vld [vmem:[#allocation10] ss:$16 sps:$4 sm:$0xff]   ;;  %v3980_v43 = vld [vmem:[#allocation10 + $0x8] ss:$16 sps:$4 sm:$0xff]   ;;  %v4072_v37 = vld [vmem:[#allocation10 + $0x1ec] ss:$16 sps:$4 sm:$0xff]  }
  0xa8   :  { %814 = vmatpush1.bf16.msra.mxu0 %v3893_v44  ;;  %857 = vmatpush1.bf16.msra.mxu1 %v3896_v45  ;;  %v3985_v44 = vld [vmem:[#allocation10 + $0x24] ss:$16 sps:$4 sm:$0xff]   ;;  %v3988_v45 = vld [vmem:[#allocation10 + $0x2c] ss:$16 sps:$4 sm:$0xff]  }
  0xa9   :  { %815 = vmatprep.subr.bf16.mxu0 %v3901_v46  ;;  %858 = vmatprep.subr.bf16.mxu1 %v3904_v47  ;;  %v3983_v46 = vld [vmem:[#allocation10 + $0x20] ss:$16 sps:$4 sm:$0xff]   ;;  %v3986_v47 = vld [vmem:[#allocation10 + $0x28] ss:$16 sps:$4 sm:$0xff]  }
  0xac   :  { %816 = vmatpush1.bf16.msra.mxu0 %v3899_v48  ;;  %859 = vmatpush1.bf16.msra.mxu1 %v3902_v49  ;;  %v3991_v48 = vld [vmem:[#allocation10 + $0x44] ss:$16 sps:$4 sm:$0xff]   ;;  %v3994_v49 = vld [vmem:[#allocation10 + $0x4c] ss:$16 sps:$4 sm:$0xff]  }
  0xad   :  { %817 = vmatprep.subr.bf16.mxu0 %v3907_v50  ;;  %860 = vmatprep.subr.bf16.mxu1 %v3910_v51  ;;  %v3989_v50 = vld [vmem:[#allocation10 + $0x40] ss:$16 sps:$4 sm:$0xff]   ;;  %v3992_v51 = vld [vmem:[#allocation10 + $0x48] ss:$16 sps:$4 sm:$0xff]  }
  0xb0   :  { %818 = vmatpush1.bf16.msra.mxu0 %v3905_v52  ;;  %861 = vmatpush1.bf16.msra.mxu1 %v3908_v53  ;;  %v3997_v52 = vld [vmem:[#allocation10 + $0x64] ss:$16 sps:$4 sm:$0xff]   ;;  %v4000_v53 = vld [vmem:[#allocation10 + $0x6c] ss:$16 sps:$4 sm:$0xff]  }
  0xb1   :  { %819 = vmatprep.subr.bf16.mxu0 %v3913_v54  ;;  %862 = vmatprep.subr.bf16.mxu1 %v3916_v55  ;;  %v3995_v54 = vld [vmem:[#allocation10 + $0x60] ss:$16 sps:$4 sm:$0xff]   ;;  %v3998_v55 = vld [vmem:[#allocation10 + $0x68] ss:$16 sps:$4 sm:$0xff]  }
  0xb4   :  { %820 = vmatpush1.bf16.msra.mxu0 %v3911_v56  ;;  %863 = vmatpush1.bf16.msra.mxu1 %v3914_v57  ;;  %v4003_v56 = vld [vmem:[#allocation10 + $0x84] ss:$16 sps:$4 sm:$0xff]   ;;  %v4006_v57 = vld [vmem:[#allocation10 + $0x8c] ss:$16 sps:$4 sm:$0xff]  }
  0xb5   :  { %821 = vmatprep.subr.bf16.mxu0 %v3919_v58  ;;  %864 = vmatprep.subr.bf16.mxu1 %v3922_v59  ;;  %v4001_v58 = vld [vmem:[#allocation10 + $0x80] ss:$16 sps:$4 sm:$0xff]   ;;  %v4004_v59 = vld [vmem:[#allocation10 + $0x88] ss:$16 sps:$4 sm:$0xff]  }
  0xb8   :  { %822 = vmatpush1.bf16.msra.mxu0 %v3917_v60  ;;  %865 = vmatpush1.bf16.msra.mxu1 %v3920_v61  ;;  %v4009_v60 = vld [vmem:[#allocation10 + $0xa4] ss:$16 sps:$4 sm:$0xff]   ;;  %v4012_v61 = vld [vmem:[#allocation10 + $0xac] ss:$16 sps:$4 sm:$0xff]  }
  0xb9   :  { %823 = vmatprep.subr.bf16.mxu0 %v3925_v62  ;;  %866 = vmatprep.subr.bf16.mxu1 %v3928_v63  ;;  %v4007_v62 = vld [vmem:[#allocation10 + $0xa0] ss:$16 sps:$4 sm:$0xff]   ;;  %v4010_v63 = vld [vmem:[#allocation10 + $0xa8] ss:$16 sps:$4 sm:$0xff]  }
  0xbc   :  { %824 = vmatpush1.bf16.msra.mxu0 %v3923_v0  ;;  %867 = vmatpush1.bf16.msra.mxu1 %v3926_v1  ;;  %v4015_v0 = vld [vmem:[#allocation10 + $0xc4] ss:$16 sps:$4 sm:$0xff]   ;;  %v4018_v1 = vld [vmem:[#allocation10 + $0xcc] ss:$16 sps:$4 sm:$0xff]  }
  0xbd   :  { %825 = vmatprep.subr.bf16.mxu0 %v3931_v2  ;;  %868 = vmatprep.subr.bf16.mxu1 %v3934_v3  ;;  %v4013_v2 = vld [vmem:[#allocation10 + $0xc0] ss:$16 sps:$4 sm:$0xff]   ;;  %v4016_v3 = vld [vmem:[#allocation10 + $0xc8] ss:$16 sps:$4 sm:$0xff]  }
  0xc0   :  { %826 = vmatpush1.bf16.msra.mxu0 %v3929_v4  ;;  %869 = vmatpush1.bf16.msra.mxu1 %v3932_v5  ;;  %v4021_v4 = vld [vmem:[#allocation10 + $0xe4] ss:$16 sps:$4 sm:$0xff]   ;;  %v4024_v5 = vld [vmem:[#allocation10 + $0xec] ss:$16 sps:$4 sm:$0xff]  }
  0xc1   :  { %827 = vmatprep.subr.bf16.mxu0 %v3937_v6  ;;  %870 = vmatprep.subr.bf16.mxu1 %v3940_v7  ;;  %v4019_v6 = vld [vmem:[#allocation10 + $0xe0] ss:$16 sps:$4 sm:$0xff]   ;;  %v4022_v7 = vld [vmem:[#allocation10 + $0xe8] ss:$16 sps:$4 sm:$0xff]  }
  0xc4   :  { %828 = vmatpush1.bf16.msra.mxu0 %v3935_v11  ;;  %871 = vmatpush1.bf16.msra.mxu1 %v3938_v12  ;;  %v4028_v11 = vld [vmem:[#allocation10 + $0x108] ss:$16 sps:$4 sm:$0xff]   ;;  %v4033_v12 = vld [vmem:[#allocation10 + $0x124] ss:$16 sps:$4 sm:$0xff]  }
  0xc5   :  { %829 = vmatprep.subr.bf16.mxu0 %v3943_v13  ;;  %872 = vmatprep.subr.bf16.mxu1 %v3946_v14  ;;  %v4036_v13 = vld [vmem:[#allocation10 + $0x12c] ss:$16 sps:$4 sm:$0xff]   ;;  %v4031_v14 = vld [vmem:[#allocation10 + $0x120] ss:$16 sps:$4 sm:$0xff]  }
  0xc8   :  { %830 = vmatpush1.bf16.msra.mxu0 %v3941_v15  ;;  %873 = vmatpush1.bf16.msra.mxu1 %v3944_v16  ;;  %v4034_v15 = vld [vmem:[#allocation10 + $0x128] ss:$16 sps:$4 sm:$0xff]   ;;  %v4039_v16 = vld [vmem:[#allocation10 + $0x144] ss:$16 sps:$4 sm:$0xff]  }
  0xc9   :  { %831 = vmatprep.subr.bf16.mxu0 %v3949_v17  ;;  %874 = vmatprep.subr.bf16.mxu1 %v3952_v18  ;;  %v4042_v17 = vld [vmem:[#allocation10 + $0x14c] ss:$16 sps:$4 sm:$0xff]   ;;  %v4037_v18 = vld [vmem:[#allocation10 + $0x140] ss:$16 sps:$4 sm:$0xff]  }
  0xcc   :  { %832 = vmatpush1.bf16.msra.mxu0 %v3947_v19  ;;  %875 = vmatpush1.bf16.msra.mxu1 %v3950_v20  ;;  %v4040_v19 = vld [vmem:[#allocation10 + $0x148] ss:$16 sps:$4 sm:$0xff]   ;;  %v4045_v20 = vld [vmem:[#allocation10 + $0x164] ss:$16 sps:$4 sm:$0xff]  }
  0xcd   :  { %833 = vmatprep.subr.bf16.mxu0 %v3955_v21  ;;  %876 = vmatprep.subr.bf16.mxu1 %v3958_v22  ;;  %v4048_v21 = vld [vmem:[#allocation10 + $0x16c] ss:$16 sps:$4 sm:$0xff]   ;;  %v4043_v22 = vld [vmem:[#allocation10 + $0x160] ss:$16 sps:$4 sm:$0xff]  }
  0xd0   :  { %834 = vmatpush1.bf16.msra.mxu0 %v3953_v23  ;;  %877 = vmatpush1.bf16.msra.mxu1 %v3956_v24  ;;  %v4046_v23 = vld [vmem:[#allocation10 + $0x168] ss:$16 sps:$4 sm:$0xff]   ;;  %v4051_v24 = vld [vmem:[#allocation10 + $0x184] ss:$16 sps:$4 sm:$0xff]  }
  0xd1   :  { %835 = vmatprep.subr.bf16.mxu0 %v3961_v25  ;;  %878 = vmatprep.subr.bf16.mxu1 %v3964_v26  ;;  %v4054_v25 = vld [vmem:[#allocation10 + $0x18c] ss:$16 sps:$4 sm:$0xff]   ;;  %v4049_v26 = vld [vmem:[#allocation10 + $0x180] ss:$16 sps:$4 sm:$0xff]  }
  0xd4   :  { %836 = vmatpush1.bf16.msra.mxu0 %v3959_v27  ;;  %879 = vmatpush1.bf16.msra.mxu1 %v3962_v28  ;;  %v4052_v27 = vld [vmem:[#allocation10 + $0x188] ss:$16 sps:$4 sm:$0xff]   ;;  %v4057_v28 = vld [vmem:[#allocation10 + $0x1a4] ss:$16 sps:$4 sm:$0xff]  }
  0xd5   :  { %837 = vmatprep.subr.bf16.mxu0 %v3967_v29  ;;  %880 = vmatprep.subr.bf16.mxu1 %v3970_v30  ;;  %v4060_v29 = vld [vmem:[#allocation10 + $0x1ac] ss:$16 sps:$4 sm:$0xff]   ;;  %v4055_v30 = vld [vmem:[#allocation10 + $0x1a0] ss:$16 sps:$4 sm:$0xff]  }
  0xd8   :  { %838 = vmatpush1.bf16.msra.mxu0 %v3965_v31  ;;  %881 = vmatpush1.bf16.msra.mxu1 %v3968_v32  ;;  %v4058_v31 = vld [vmem:[#allocation10 + $0x1a8] ss:$16 sps:$4 sm:$0xff]   ;;  %v4063_v32 = vld [vmem:[#allocation10 + $0x1c4] ss:$16 sps:$4 sm:$0xff]  }
  0xd9   :  { %839 = vmatprep.subr.bf16.mxu0 %v3973_v33  ;;  %882 = vmatprep.subr.bf16.mxu1 %v3976_v34  ;;  %v4066_v33 = vld [vmem:[#allocation10 + $0x1cc] ss:$16 sps:$4 sm:$0xff]   ;;  %v4061_v34 = vld [vmem:[#allocation10 + $0x1c0] ss:$16 sps:$4 sm:$0xff]  }
  0xdc   :  { %840 = vmatpush1.bf16.msra.mxu0 %v3971_v35  ;;  %883 = vmatpush1.bf16.msra.mxu1 %v3974_v36  ;;  %v4064_v35 = vld [vmem:[#allocation10 + $0x1c8] ss:$16 sps:$4 sm:$0xff]   ;;  %v4069_v36 = vld [vmem:[#allocation10 + $0x1e4] ss:$16 sps:$4 sm:$0xff]  }
  0xdd   :  { %1733 = vmatprep.subr.bf16.mxu0 %v3979_v39  ;;  %1819 = vmatprep.subr.bf16.mxu1 %v3982_v40  ;;  %v4070_v39 = vld [vmem:[#allocation10 + $0x1e8] ss:$16 sps:$4 sm:$0xff]   ;;  %v4075_v40 = vld [vmem:[#allocation10 + $0x204] ss:$16 sps:$4 sm:$0xff]  }
  0xdf   :  { %842 = vmatmul.mubr.bf16.vlgmr.msra.gmra.mrb[0].mxu0 %v137_v41  ;;  %885 = vmatmul.mubr.bf16.vlgmr.msra.gmra.mrb[0].mxu1 %v137_v41  ;;  %v4078_v41 = vld [vmem:[#allocation10 + $0x20c] ss:$16 sps:$4 sm:$0xff]  }
  0xe0   :  { %1734 = vmatpush1.bf16.msra.mxu0 %v3977_v42  ;;  %1820 = vmatpush1.bf16.msra.mxu1 %v3980_v43  ;;  %v4591_v42 = vmov 1966171168  }
  0xe1   :  { %1735 = vmatprep.subr.bf16.mxu0 %v3985_v44  ;;  %1821 = vmatprep.subr.bf16.mxu1 %v3988_v45  ;;  %v910_v43 = vunpack.c.l.s4 %v4591_v42  ;;  %v912_v44 = vlaneseq  ;;  %v4112_v42 = vld [vmem:[#allocation10 + $0x2c8] ss:$16 sps:$4 sm:$0xff]  }
  0xe3   :  { %v911_v45 = vunpack.c.0.s8 %v910_v43  ;;  %v4117_v43 = vld [vmem:[#allocation10 + $0x2e4] ss:$16 sps:$4 sm:$0xff]  }
  0xe4   :  { %1736 = vmatpush1.bf16.msra.mxu0 %v3983_v46  ;;  %1822 = vmatpush1.bf16.msra.mxu1 %v3986_v47  ;;  %v913_v46 = vshrl.u32 %v912_v44, 7  ;;  %v3450_v47 = vld.sshfl [vmem:[%s4833_s4] sm:$0x33 pattern:$0x75316420] }
  0xe5   :  { %1737 = vmatprep.subr.bf16.mxu0 %v3991_v48  ;;  %1823 = vmatprep.subr.bf16.mxu1 %v3994_v49  ;;  %v908_v49 = vcombine.high %v3450_v47, %v3450_v47  ;;  %v4120_v44 = vld [vmem:[#allocation10 + $0x2ec] ss:$16 sps:$4 sm:$0xff]  }
  0xe6   :  { %v4756_v48 = vsub.s32 %v911_v45, %v913_v46  ;;  %v4115_v45 = vld [vmem:[#allocation10 + $0x2e0] ss:$16 sps:$4 sm:$0xff]  }
  0xe8   :  { %1738 = vmatpush1.bf16.msra.mxu0 %v3989_v50  ;;  %1824 = vmatpush1.bf16.msra.mxu1 %v3992_v51  ;;  %v922_v50 = vrot.slane %v908_v49, %v4756_v48  ;;  %v4126_v49 = vld [vmem:[#allocation10 + $0x30c] ss:$16 sps:$4 sm:$0xff]  }
  0xe9   :  { %1739 = vmatprep.subr.bf16.mxu0 %v3997_v52  ;;  %1825 = vmatprep.subr.bf16.mxu1 %v4000_v53  ;;  %v4760_v52 = vrot.slane %v3450_v47, %v4756_v48  ;;  %v4123_v47 = vld [vmem:[#allocation10 + $0x304] ss:$16 sps:$4 sm:$0xff]  }
  0xea   :  { %v924_v51 = vcombine.high %v922_v50, %v922_v50 }
  0xeb   :  { %v926_v53 = vpack.i.b16 %v4760_v52, %v4760_v52 }
  0xec   :  { %1740 = vmatpush1.bf16.msra.mxu0 %v3995_v54  ;;  %1826 = vmatpush1.bf16.msra.mxu1 %v3998_v55  ;;  %v4764_v54 = vsub.s32 0, %v913_v46  ;;  %v933_v55 = vpack.i.b16 %v922_v50, %v922_v50  ;;  %v4118_v46 = vld [vmem:[#allocation10 + $0x2e8] ss:$16 sps:$4 sm:$0xff]   ;;  %v4121_v50 = vld [vmem:[#allocation10 + $0x300] ss:$16 sps:$4 sm:$0xff]  }
  0xed   :  { %1741 = vmatprep.subr.bf16.mxu0 %v4003_v56  ;;  %1827 = vmatprep.subr.bf16.mxu1 %v4006_v57  ;;  %v947_v56 = vpack.i.b16 %v924_v51, %v924_v51  ;;  %v4124_v51 = vld [vmem:[#allocation10 + $0x308] ss:$16 sps:$4 sm:$0xff]  }
  0xf0   :  { %1742 = vmatpush1.bf16.msra.mxu0 %v4001_v58  ;;  %1828 = vmatpush1.bf16.msra.mxu1 %v4004_v59 }
  0xf1   :  { %1743 = vmatprep.subr.bf16.mxu0 %v4009_v60  ;;  %1829 = vmatprep.subr.bf16.mxu1 %v4012_v61  ;;  %v931_v61 = vrot.slane %v926_v53, %v4764_v54  ;;  %v4129_v53 = vld [vmem:[#allocation10 + $0x324] ss:$16 sps:$4 sm:$0xff]  }
  0xf4   :  { %1744 = vmatpush1.bf16.msra.mxu0 %v4007_v62  ;;  %1830 = vmatpush1.bf16.msra.mxu1 %v4010_v63 }
  0xf5   :  { %1745 = vmatprep.subr.bf16.mxu0 %v4015_v0  ;;  %1831 = vmatprep.subr.bf16.mxu1 %v4018_v1  ;;  %v938_v0 = vrot.slane %v933_v55, %v4764_v54  ;;  %v952_v1 = vrot.slane %v947_v56, %v4764_v54  ;;  %v4132_v55 = vld [vmem:[#allocation10 + $0x32c] ss:$16 sps:$4 sm:$0xff]   ;;  %v4127_v56 = vld [vmem:[#allocation10 + $0x320] ss:$16 sps:$4 sm:$0xff]  }
  0xf8   :  { %1746 = vmatpush1.bf16.msra.mxu0 %v4013_v2  ;;  %1832 = vmatpush1.bf16.msra.mxu1 %v4016_v3 }
  0xf9   :  { %1747 = vmatprep.subr.bf16.mxu0 %v4021_v4  ;;  %1833 = vmatprep.subr.bf16.mxu1 %v4024_v5 }
  0xfc   :  { %1748 = vmatpush1.bf16.msra.mxu0 %v4019_v6  ;;  %1834 = vmatpush1.bf16.msra.mxu1 %v4022_v7 }
  0xfd   :  { %1749 = vmatprep.subr.bf16.mxu0 %v4027_v8  ;;  %1835 = vmatprep.subr.bf16.mxu1 %v4030_v9 }
 0x100   :  { %1750 = vmatpush1.bf16.msra.mxu0 %v4025_v10  ;;  %1836 = vmatpush1.bf16.msra.mxu1 %v4028_v11 }
 0x101   :  { %1751 = vmatprep.subr.bf16.mxu0 %v4033_v12  ;;  %1837 = vmatprep.subr.bf16.mxu1 %v4036_v13 }
 0x104   :  { %1752 = vmatpush1.bf16.msra.mxu0 %v4031_v14  ;;  %1838 = vmatpush1.bf16.msra.mxu1 %v4034_v15  ;;  %v4073_v15 = vld [vmem:[#allocation10 + $0x200] ss:$16 sps:$4 sm:$0xff]  }
 0x105   :  { %1753 = vmatprep.subr.bf16.mxu0 %v4039_v16  ;;  %1839 = vmatprep.subr.bf16.mxu1 %v4042_v17  ;;  %v4076_v16 = vld [vmem:[#allocation10 + $0x208] ss:$16 sps:$4 sm:$0xff]  }
 0x108   :  { %1754 = vmatpush1.bf16.msra.mxu0 %v4037_v18  ;;  %1840 = vmatpush1.bf16.msra.mxu1 %v4040_v19  ;;  %v4081_v18 = vld [vmem:[#allocation10 + $0x224] ss:$16 sps:$4 sm:$0xff]   ;;  %v4084_v19 = vld [vmem:[#allocation10 + $0x22c] ss:$16 sps:$4 sm:$0xff]  }
 0x109   :  { %1755 = vmatprep.subr.bf16.mxu0 %v4045_v20  ;;  %1841 = vmatprep.subr.bf16.mxu1 %v4048_v21  ;;  %v4079_v21 = vld [vmem:[#allocation10 + $0x220] ss:$16 sps:$4 sm:$0xff]  }
 0x10c   :  { %1756 = vmatpush1.bf16.msra.mxu0 %v4043_v22  ;;  %1842 = vmatpush1.bf16.msra.mxu1 %v4046_v23  ;;  %v4082_v22 = vld [vmem:[#allocation10 + $0x228] ss:$16 sps:$4 sm:$0xff]   ;;  %v4087_v23 = vld [vmem:[#allocation10 + $0x244] ss:$16 sps:$4 sm:$0xff]  }
 0x10d   :  { %1757 = vmatprep.subr.bf16.mxu0 %v4051_v24  ;;  %1843 = vmatprep.subr.bf16.mxu1 %v4054_v25  ;;  %v4090_v24 = vld [vmem:[#allocation10 + $0x24c] ss:$16 sps:$4 sm:$0xff]   ;;  %v4085_v25 = vld [vmem:[#allocation10 + $0x240] ss:$16 sps:$4 sm:$0xff]  }
 0x110   :  { %1758 = vmatpush1.bf16.msra.mxu0 %v4049_v26  ;;  %1844 = vmatpush1.bf16.msra.mxu1 %v4052_v27  ;;  %v4088_v26 = vld [vmem:[#allocation10 + $0x248] ss:$16 sps:$4 sm:$0xff]   ;;  %v4093_v27 = vld [vmem:[#allocation10 + $0x264] ss:$16 sps:$4 sm:$0xff]  }
 0x111   :  { %1759 = vmatprep.subr.bf16.mxu0 %v4057_v28  ;;  %1845 = vmatprep.subr.bf16.mxu1 %v4060_v29  ;;  %v4096_v28 = vld [vmem:[#allocation10 + $0x26c] ss:$16 sps:$4 sm:$0xff]   ;;  %v4091_v29 = vld [vmem:[#allocation10 + $0x260] ss:$16 sps:$4 sm:$0xff]  }
 0x114   :  { %1760 = vmatpush1.bf16.msra.mxu0 %v4055_v30  ;;  %1846 = vmatpush1.bf16.msra.mxu1 %v4058_v31  ;;  %v4094_v30 = vld [vmem:[#allocation10 + $0x268] ss:$16 sps:$4 sm:$0xff]   ;;  %v4099_v31 = vld [vmem:[#allocation10 + $0x284] ss:$16 sps:$4 sm:$0xff]  }
 0x115   :  { %1761 = vmatprep.subr.bf16.mxu0 %v4063_v32  ;;  %1847 = vmatprep.subr.bf16.mxu1 %v4066_v33  ;;  %v4102_v32 = vld [vmem:[#allocation10 + $0x28c] ss:$16 sps:$4 sm:$0xff]   ;;  %v4097_v33 = vld [vmem:[#allocation10 + $0x280] ss:$16 sps:$4 sm:$0xff]  }
 0x118   :  { %1762 = vmatpush1.bf16.msra.mxu0 %v4061_v34  ;;  %1848 = vmatpush1.bf16.msra.mxu1 %v4064_v35  ;;  %v4100_v34 = vld [vmem:[#allocation10 + $0x288] ss:$16 sps:$4 sm:$0xff]   ;;  %v4105_v35 = vld [vmem:[#allocation10 + $0x2a4] ss:$16 sps:$4 sm:$0xff]  }
 0x119   :  { %1763 = vmatprep.subr.bf16.mxu0 %v4069_v36  ;;  %1849 = vmatprep.subr.bf16.mxu1 %v4072_v37  ;;  %v4108_v36 = vld [vmem:[#allocation10 + $0x2ac] ss:$16 sps:$4 sm:$0xff]   ;;  %v4103_v37 = vld [vmem:[#allocation10 + $0x2a0] ss:$16 sps:$4 sm:$0xff]  }
 0x11c   :  { %1764 = vmatpush1.bf16.msra.mxu0 %v4067_v38  ;;  %1850 = vmatpush1.bf16.msra.mxu1 %v4070_v39  ;;  %v4106_v38 = vld [vmem:[#allocation10 + $0x2a8] ss:$16 sps:$4 sm:$0xff]   ;;  %v4111_v39 = vld [vmem:[#allocation10 + $0x2c4] ss:$16 sps:$4 sm:$0xff]  }
 0x11d   :  { %1776 = vmatprep.subr.bf16.mxu0 %v4075_v40  ;;  %1862 = vmatprep.subr.bf16.mxu1 %v4078_v41  ;;  %v4114_v40 = vld [vmem:[#allocation10 + $0x2cc] ss:$16 sps:$4 sm:$0xff]   ;;  %v4109_v41 = vld [vmem:[#allocation10 + $0x2c0] ss:$16 sps:$4 sm:$0xff]  }
 0x1b2   :  { %v843_v57 = vpop.f32.mrb[0].mxu0  ;;  %v4766_v58 = vpop.f32.mrb[0].mxu1 }
 0x1b3   :  { %v845_v59 = vpop.f32.mrb[1].mxu0  ;;  %v888_v60 = vpop.f32.mrb[1].mxu1 }
 0x1b4   :  { %v847_v62 = vpop.f32.mrb[2].mxu0  ;;  %v4769_v63 = vpop.f32.mrb[2].mxu1 }
 0x1b5   :  { %v895_v2 = vpack.c.bf16 %v847_v62, %v843_v57  ;;  %v897_v3 = vpack.c.bf16 %v4769_v63, %v4766_v58  ;;  %v849_v4 = vpop.f32.mrb[3].mxu0  ;;  %v892_v5 = vpop.f32.mrb[3].mxu1  ;;  %v4130_v57 = vld [vmem:[#allocation10 + $0x328] ss:$16 sps:$4 sm:$0xff]   ;;  %v4177_v58 = vld [vmem:[#allocation11 + $0x24] ss:$16 sps:$4 sm:$0xff]  }
 0x1b6   :  { %v896_v6 = vpack.c.bf16 %v849_v4, %v845_v59  ;;  %v898_v7 = vpack.c.bf16 %v892_v5, %v888_v60  ;;  %v4135_v59 = vld [vmem:[#allocation10 + $0x344] ss:$16 sps:$4 sm:$0xff]   ;;  %v4138_v60 = vld [vmem:[#allocation10 + $0x34c] ss:$16 sps:$4 sm:$0xff]   ;;  %v4136_v62 = vld [vmem:[#allocation10 + $0x348] ss:$16 sps:$4 sm:$0xff]   ;;  %v923_v5 = vcombine.high %v4760_v52, %v4760_v52 }
 0x1b7   :  { %v953_v8 = vadd.bf16 %v931_v61, %v895_v2  ;;  %v4133_v61 = vld [vmem:[#allocation10 + $0x340] ss:$16 sps:$4 sm:$0xff]   ;;  %v4142_v4 = vld [vmem:[#allocation10 + $0x368] ss:$16 sps:$4 sm:$0xff]   ;;  %v4159_v52 = vld [vmem:[#allocation10 + $0x3c4] ss:$16 sps:$4 sm:$0xff]  }
 0x1b8   :  { %v954_v9 = vadd.bf16 %v938_v0, %v896_v6  ;;  %v956_v10 = vadd.bf16 %v952_v1, %v898_v7  ;;  %v4141_v0 = vld [vmem:[#allocation10 + $0x364] ss:$16 sps:$4 sm:$0xff]   ;;  %v4144_v1 = vld [vmem:[#allocation10 + $0x36c] ss:$16 sps:$4 sm:$0xff]   ;;  %v4139_v2 = vld [vmem:[#allocation10 + $0x360] ss:$16 sps:$4 sm:$0xff]  }
 0x1b9   :  { %v957_v11 = vmul.bf16 1045249613, %v953_v8  ;;  %v4147_v6 = vld [vmem:[#allocation10 + $0x384] ss:$16 sps:$4 sm:$0xff]   ;;  %v4150_v7 = vld [vmem:[#allocation10 + $0x38c] ss:$16 sps:$4 sm:$0xff]  }
 0x1ba   :  { %v958_v12 = vmul.bf16 1045249613, %v954_v9  ;;  %v960_v13 = vmul.bf16 1045249613, %v956_v10  ;;  %v4180_v63 = vld [vmem:[#allocation11 + $0x2c] ss:$16 sps:$4 sm:$0xff]  }
 0x1bb   :  { %v961_v17 = vmax.bf16 %v957_v11, %v953_v8  ;;  %v4145_v8 = vld [vmem:[#allocation10 + $0x380] ss:$16 sps:$4 sm:$0xff]   ;;  %v4153_v11 = vld [vmem:[#allocation10 + $0x3a4] ss:$16 sps:$4 sm:$0xff]  }
 0x1bc   :  { %v962_v14 = vmax.bf16 %v958_v12, %v954_v9  ;;  %v964_v20 = vmax.bf16 %v960_v13, %v956_v10  ;;  %v4148_v9 = vld [vmem:[#allocation10 + $0x388] ss:$16 sps:$4 sm:$0xff]   ;;  %v940_v10 = vpack.i.b16 %v923_v5, %v923_v5  ;;  %v4156_v12 = vld [vmem:[#allocation10 + $0x3ac] ss:$16 sps:$4 sm:$0xff]   ;;  %v4151_v13 = vld [vmem:[#allocation10 + $0x3a0] ss:$16 sps:$4 sm:$0xff]  }
 0x1bd   :  { %v4231_v5 = vld [vmem:[#allocation11 + $0x144] ss:$16 sps:$4 sm:$0xff]  }
 0x1be   :  { %1765 = vmatprep.mubr.bf16.mxu0 %v962_v14  ;;  %1851 = vmatprep.mubr.bf16.mxu1 %v962_v14  ;;  %v4154_v14 = vld [vmem:[#allocation10 + $0x3a8] ss:$16 sps:$4 sm:$0xff]  }
 0x1bf   :  { %1766 = vmatmul.mubr.bf16.vlgmr.msra.gmra.mrb[4].mxu0 %v961_v17  ;;  %1852 = vmatmul.mubr.bf16.vlgmr.msra.gmra.mrb[4].mxu1 %v961_v17  ;;  %v4157_v17 = vld [vmem:[#allocation10 + $0x3c0] ss:$16 sps:$4 sm:$0xff]  }
 0x1c0   :  { %1777 = vmatpush1.bf16.msra.mxu0 %v4073_v15  ;;  %1863 = vmatpush1.bf16.msra.mxu1 %v4076_v16  ;;  %v945_v15 = vrot.slane %v940_v10, %v4764_v54  ;;  %v4162_v16 = vld [vmem:[#allocation10 + $0x3cc] ss:$16 sps:$4 sm:$0xff]  }
 0x1c1   :  { %1808 = vmatprep.mubr.bf16.mxu0 %v964_v20  ;;  %1894 = vmatprep.mubr.bf16.mxu1 %v964_v20  ;;  %v4165_v20 = vld [vmem:[#allocation10 + $0x3e4] ss:$16 sps:$4 sm:$0xff]   ;;  %v4240_v10 = vld [vmem:[#allocation11 + $0x16c] ss:$16 sps:$4 sm:$0xff]  }
 0x1c2   :  { %1778 = vmatprep.subr.bf16.mxu0 %v4081_v18  ;;  %1864 = vmatprep.subr.bf16.mxu1 %v4084_v19  ;;  %v4160_v18 = vld [vmem:[#allocation10 + $0x3c8] ss:$16 sps:$4 sm:$0xff]   ;;  %v955_v19 = vadd.bf16 %v945_v15, %v897_v3  ;;  %v4175_v3 = vld [vmem:[#allocation11 + $0x20] ss:$16 sps:$4 sm:$0xff]  }
 0x1c3   :  { %v4241_v15 = vld [vmem:[#allocation11 + $0x180] ss:$16 sps:$4 sm:$0xff]  }
 0x1c4   :  { %1779 = vmatpush1.bf16.msra.mxu0 %v4079_v21  ;;  %1865 = vmatpush1.bf16.msra.mxu1 %v4082_v22  ;;  %v4168_v21 = vld [vmem:[#allocation10 + $0x3ec] ss:$16 sps:$4 sm:$0xff]   ;;  %v4163_v22 = vld [vmem:[#allocation10 + $0x3e0] ss:$16 sps:$4 sm:$0xff]  }
 0x1c5   :  { %1780 = vmatprep.subr.bf16.mxu0 %v4087_v23  ;;  %1866 = vmatprep.subr.bf16.mxu1 %v4090_v24  ;;  %v4166_v23 = vld [vmem:[#allocation10 + $0x3e8] ss:$16 sps:$4 sm:$0xff]   ;;  %v959_v24 = vmul.bf16 1045249613, %v955_v19 }
 0x1c8   :  { %1781 = vmatpush1.bf16.msra.mxu0 %v4085_v25  ;;  %1867 = vmatpush1.bf16.msra.mxu1 %v4088_v26  ;;  %v4171_v25 = vld [vmem:[#allocation11 + $0x4] ss:$16 sps:$4 sm:$0xff]   ;;  %v4174_v26 = vld [vmem:[#allocation11 + $0xc] ss:$16 sps:$4 sm:$0xff]  }
 0x1c9   :  { %1782 = vmatprep.subr.bf16.mxu0 %v4093_v27  ;;  %1868 = vmatprep.subr.bf16.mxu1 %v4096_v28  ;;  %v4169_v27 = vld [vmem:[#allocation11] ss:$16 sps:$4 sm:$0xff]   ;;  %v4172_v28 = vld [vmem:[#allocation11 + $0x8] ss:$16 sps:$4 sm:$0xff]  }
 0x1cc   :  { %1783 = vmatpush1.bf16.msra.mxu0 %v4091_v29  ;;  %1869 = vmatpush1.bf16.msra.mxu1 %v4094_v30  ;;  %v963_v29 = vmax.bf16 %v959_v24, %v955_v19  ;;  %v4178_v30 = vld [vmem:[#allocation11 + $0x28] ss:$16 sps:$4 sm:$0xff]   ;;  %v4261_v24 = vld [vmem:[#allocation11 + $0x1e4] ss:$16 sps:$4 sm:$0xff]  }
 0x1cd   :  { %1784 = vmatprep.subr.bf16.mxu0 %v4099_v31  ;;  %1870 = vmatprep.subr.bf16.mxu1 %v4102_v32  ;;  %v4183_v31 = vld [vmem:[#allocation11 + $0x44] ss:$16 sps:$4 sm:$0xff]   ;;  %v4186_v32 = vld [vmem:[#allocation11 + $0x4c] ss:$16 sps:$4 sm:$0xff]   ;;  %v4250_v19 = vld [vmem:[#allocation11 + $0x1a8] ss:$16 sps:$4 sm:$0xff]  }
 0x1d0   :  { %1785 = vmatpush1.bf16.msra.mxu0 %v4097_v33  ;;  %1871 = vmatpush1.bf16.msra.mxu1 %v4100_v34  ;;  %v4181_v33 = vld [vmem:[#allocation11 + $0x40] ss:$16 sps:$4 sm:$0xff]   ;;  %v4184_v34 = vld [vmem:[#allocation11 + $0x48] ss:$16 sps:$4 sm:$0xff]  }
 0x1d1   :  { %1786 = vmatprep.subr.bf16.mxu0 %v4105_v35  ;;  %1872 = vmatprep.subr.bf16.mxu1 %v4108_v36  ;;  %v4189_v35 = vld [vmem:[#allocation11 + $0x64] ss:$16 sps:$4 sm:$0xff]   ;;  %v4192_v36 = vld [vmem:[#allocation11 + $0x6c] ss:$16 sps:$4 sm:$0xff]  }
 0x1d4   :  { %1787 = vmatpush1.bf16.msra.mxu0 %v4103_v37  ;;  %1873 = vmatpush1.bf16.msra.mxu1 %v4106_v38  ;;  %v4187_v37 = vld [vmem:[#allocation11 + $0x60] ss:$16 sps:$4 sm:$0xff]   ;;  %v4190_v38 = vld [vmem:[#allocation11 + $0x68] ss:$16 sps:$4 sm:$0xff]  }
 0x1d5   :  { %1788 = vmatprep.subr.bf16.mxu0 %v4111_v39  ;;  %1874 = vmatprep.subr.bf16.mxu1 %v4114_v40  ;;  %v4195_v39 = vld [vmem:[#allocation11 + $0x84] ss:$16 sps:$4 sm:$0xff]   ;;  %v4198_v40 = vld [vmem:[#allocation11 + $0x8c] ss:$16 sps:$4 sm:$0xff]  }
 0x1d8   :  { %1789 = vmatpush1.bf16.msra.mxu0 %v4109_v41  ;;  %1875 = vmatpush1.bf16.msra.mxu1 %v4112_v42  ;;  %v4193_v41 = vld [vmem:[#allocation11 + $0x80] ss:$16 sps:$4 sm:$0xff]   ;;  %v4196_v42 = vld [vmem:[#allocation11 + $0x88] ss:$16 sps:$4 sm:$0xff]  }
 0x1d9   :  { %1790 = vmatprep.subr.bf16.mxu0 %v4117_v43  ;;  %1876 = vmatprep.subr.bf16.mxu1 %v4120_v44  ;;  %v4201_v43 = vld [vmem:[#allocation11 + $0xa4] ss:$16 sps:$4 sm:$0xff]   ;;  %v4204_v44 = vld [vmem:[#allocation11 + $0xac] ss:$16 sps:$4 sm:$0xff]  }
 0x1dc   :  { %1791 = vmatpush1.bf16.msra.mxu0 %v4115_v45  ;;  %1877 = vmatpush1.bf16.msra.mxu1 %v4118_v46  ;;  %v4199_v45 = vld [vmem:[#allocation11 + $0xa0] ss:$16 sps:$4 sm:$0xff]   ;;  %v4202_v46 = vld [vmem:[#allocation11 + $0xa8] ss:$16 sps:$4 sm:$0xff]  }
 0x1dd   :  { %1792 = vmatprep.subr.bf16.mxu0 %v4123_v47  ;;  %1878 = vmatprep.subr.bf16.mxu1 %v4126_v49  ;;  %v4207_v47 = vld [vmem:[#allocation11 + $0xc4] ss:$16 sps:$4 sm:$0xff]   ;;  %v4210_v49 = vld [vmem:[#allocation11 + $0xcc] ss:$16 sps:$4 sm:$0xff]  }
 0x1e0   :  { %1793 = vmatpush1.bf16.msra.mxu0 %v4121_v50  ;;  %1879 = vmatpush1.bf16.msra.mxu1 %v4124_v51  ;;  %v4205_v50 = vld [vmem:[#allocation11 + $0xc0] ss:$16 sps:$4 sm:$0xff]   ;;  %v4208_v51 = vld [vmem:[#allocation11 + $0xc8] ss:$16 sps:$4 sm:$0xff]  }
 0x1e1   :  { %1794 = vmatprep.subr.bf16.mxu0 %v4129_v53  ;;  %1880 = vmatprep.subr.bf16.mxu1 %v4132_v55  ;;  %v4213_v53 = vld [vmem:[#allocation11 + $0xe4] ss:$16 sps:$4 sm:$0xff]   ;;  %v4216_v55 = vld [vmem:[#allocation11 + $0xec] ss:$16 sps:$4 sm:$0xff]  }
 0x1e4   :  { %1795 = vmatpush1.bf16.msra.mxu0 %v4127_v56  ;;  %1881 = vmatpush1.bf16.msra.mxu1 %v4130_v57  ;;  %v4211_v56 = vld [vmem:[#allocation11 + $0xe0] ss:$16 sps:$4 sm:$0xff]   ;;  %v4214_v57 = vld [vmem:[#allocation11 + $0xe8] ss:$16 sps:$4 sm:$0xff]  }
 0x1e5   :  { %1796 = vmatprep.subr.bf16.mxu0 %v4135_v59  ;;  %1882 = vmatprep.subr.bf16.mxu1 %v4138_v60  ;;  %v4219_v59 = vld [vmem:[#allocation11 + $0x104] ss:$16 sps:$4 sm:$0xff]   ;;  %v4222_v60 = vld [vmem:[#allocation11 + $0x10c] ss:$16 sps:$4 sm:$0xff]  }
 0x1e8   :  { %1797 = vmatpush1.bf16.msra.mxu0 %v4133_v61  ;;  %1883 = vmatpush1.bf16.msra.mxu1 %v4136_v62  ;;  %v4217_v61 = vld [vmem:[#allocation11 + $0x100] ss:$16 sps:$4 sm:$0xff]   ;;  %v4220_v62 = vld [vmem:[#allocation11 + $0x108] ss:$16 sps:$4 sm:$0xff]  }
 0x1e9   :  { %1798 = vmatprep.subr.bf16.mxu0 %v4141_v0  ;;  %1884 = vmatprep.subr.bf16.mxu1 %v4144_v1  ;;  %v4225_v0 = vld [vmem:[#allocation11 + $0x124] ss:$16 sps:$4 sm:$0xff]   ;;  %v4228_v1 = vld [vmem:[#allocation11 + $0x12c] ss:$16 sps:$4 sm:$0xff]  }
 0x1ec   :  { %1799 = vmatpush1.bf16.msra.mxu0 %v4139_v2  ;;  %1885 = vmatpush1.bf16.msra.mxu1 %v4142_v4  ;;  %v4223_v2 = vld [vmem:[#allocation11 + $0x120] ss:$16 sps:$4 sm:$0xff]   ;;  %v4226_v4 = vld [vmem:[#allocation11 + $0x128] ss:$16 sps:$4 sm:$0xff]  }
 0x1ed   :  { %1800 = vmatprep.subr.bf16.mxu0 %v4147_v6  ;;  %1886 = vmatprep.subr.bf16.mxu1 %v4150_v7  ;;  %v4234_v6 = vld [vmem:[#allocation11 + $0x14c] ss:$16 sps:$4 sm:$0xff]   ;;  %v4229_v7 = vld [vmem:[#allocation11 + $0x140] ss:$16 sps:$4 sm:$0xff]  }
 0x1f0   :  { %1801 = vmatpush1.bf16.msra.mxu0 %v4145_v8  ;;  %1887 = vmatpush1.bf16.msra.mxu1 %v4148_v9  ;;  %v4232_v8 = vld [vmem:[#allocation11 + $0x148] ss:$16 sps:$4 sm:$0xff]   ;;  %v4237_v9 = vld [vmem:[#allocation11 + $0x164] ss:$16 sps:$4 sm:$0xff]  }
 0x1f1   :  { %1802 = vmatprep.subr.bf16.mxu0 %v4153_v11  ;;  %1888 = vmatprep.subr.bf16.mxu1 %v4156_v12  ;;  %v4235_v11 = vld [vmem:[#allocation11 + $0x160] ss:$16 sps:$4 sm:$0xff]   ;;  %v4238_v12 = vld [vmem:[#allocation11 + $0x168] ss:$16 sps:$4 sm:$0xff]  }
 0x1f4   :  { %1803 = vmatpush1.bf16.msra.mxu0 %v4151_v13  ;;  %1889 = vmatpush1.bf16.msra.mxu1 %v4154_v14  ;;  %v4243_v13 = vld [vmem:[#allocation11 + $0x184] ss:$16 sps:$4 sm:$0xff]   ;;  %v4246_v14 = vld [vmem:[#allocation11 + $0x18c] ss:$16 sps:$4 sm:$0xff]  }
 0x1f5   :  { %1804 = vmatprep.subr.bf16.mxu0 %v4159_v52  ;;  %1890 = vmatprep.subr.bf16.mxu1 %v4162_v16  ;;  %v4244_v52 = vld [vmem:[#allocation11 + $0x188] ss:$16 sps:$4 sm:$0xff]   ;;  %v4249_v16 = vld [vmem:[#allocation11 + $0x1a4] ss:$16 sps:$4 sm:$0xff]  }
 0x1f8   :  { %1805 = vmatpush1.bf16.msra.mxu0 %v4157_v17  ;;  %1891 = vmatpush1.bf16.msra.mxu1 %v4160_v18  ;;  %v4252_v17 = vld [vmem:[#allocation11 + $0x1ac] ss:$16 sps:$4 sm:$0xff]   ;;  %v4247_v18 = vld [vmem:[#allocation11 + $0x1a0] ss:$16 sps:$4 sm:$0xff]  }
 0x1f9   :  { %1806 = vmatprep.subr.bf16.mxu0 %v4165_v20  ;;  %1892 = vmatprep.subr.bf16.mxu1 %v4168_v21  ;;  %v4255_v20 = vld [vmem:[#allocation11 + $0x1c4] ss:$16 sps:$4 sm:$0xff]   ;;  %v4258_v21 = vld [vmem:[#allocation11 + $0x1cc] ss:$16 sps:$4 sm:$0xff]  }
 0x1fc   :  { %1807 = vmatpush1.bf16.msra.mxu0 %v4163_v22  ;;  %1893 = vmatpush1.bf16.msra.mxu1 %v4166_v23  ;;  %v4253_v22 = vld [vmem:[#allocation11 + $0x1c0] ss:$16 sps:$4 sm:$0xff]   ;;  %v4256_v23 = vld [vmem:[#allocation11 + $0x1c8] ss:$16 sps:$4 sm:$0xff]  }
 0x1fd   :  { %2743 = vmatprep.subr.bf16.mxu0 %v4171_v25  ;;  %2829 = vmatprep.subr.bf16.mxu1 %v4174_v26  ;;  %v4264_v25 = vld [vmem:[#allocation11 + $0x1ec] ss:$16 sps:$4 sm:$0xff]   ;;  %v4259_v26 = vld [vmem:[#allocation11 + $0x1e0] ss:$16 sps:$4 sm:$0xff]  }
 0x1ff   :  { %1809 = vmatmul.mubr.bf16.vlgmr.msra.gmra.mrb[4].mxu0 %v963_v29  ;;  %1895 = vmatmul.mubr.bf16.vlgmr.msra.gmra.mrb[4].mxu1 %v963_v29  ;;  %v4270_v29 = vld [vmem:[#allocation11 + $0x20c] ss:$16 sps:$4 sm:$0xff]  }
 0x200   :  { %2744 = vmatpush1.bf16.msra.mxu0 %v4169_v27  ;;  %2830 = vmatpush1.bf16.msra.mxu1 %v4172_v28  ;;  %v4262_v27 = vld [vmem:[#allocation11 + $0x1e8] ss:$16 sps:$4 sm:$0xff]   ;;  %v4267_v28 = vld [vmem:[#allocation11 + $0x204] ss:$16 sps:$4 sm:$0xff]  }
 0x201   :  { %2745 = vmatprep.subr.bf16.mxu0 %v4177_v58  ;;  %2831 = vmatprep.subr.bf16.mxu1 %v4180_v63  ;;  %v3579_v58 = vld.sshfl [vmem:[%s4835_s6] sm:$0x33 pattern:$0x75316420] }
 0x202   :  { %v1918_v63 = vcombine.high %v3579_v58, %v3579_v58 }
 0x204   :  { %2746 = vmatpush1.bf16.msra.mxu0 %v4175_v3  ;;  %2832 = vmatpush1.bf16.msra.mxu1 %v4178_v30  ;;  %v1932_v3 = vrot.slane %v1918_v63, %v4756_v48  ;;  %v4318_v63 = vld [vmem:[#allocation11 + $0x30c] ss:$16 sps:$4 sm:$0xff]  }
 0x205   :  { %2747 = vmatprep.subr.bf16.mxu0 %v4183_v31  ;;  %2833 = vmatprep.subr.bf16.mxu1 %v4186_v32  ;;  %v4786_v31 = vrot.slane %v3579_v58, %v4756_v48  ;;  %v4315_v58 = vld [vmem:[#allocation11 + $0x304] ss:$16 sps:$4 sm:$0xff]  }
 0x206   :  { %v1934_v30 = vcombine.high %v1932_v3, %v1932_v3 }
 0x207   :  { %v1936_v32 = vpack.i.b16 %v4786_v31, %v4786_v31 }
 0x208   :  { %2748 = vmatpush1.bf16.msra.mxu0 %v4181_v33  ;;  %2834 = vmatpush1.bf16.msra.mxu1 %v4184_v34  ;;  %v1943_v33 = vpack.i.b16 %v1932_v3, %v1932_v3  ;;  %v1957_v34 = vpack.i.b16 %v1934_v30, %v1934_v30  ;;  %v4313_v3 = vld [vmem:[#allocation11 + $0x300] ss:$16 sps:$4 sm:$0xff]   ;;  %v4316_v30 = vld [vmem:[#allocation11 + $0x308] ss:$16 sps:$4 sm:$0xff]  }
 0x209   :  { %2749 = vmatprep.subr.bf16.mxu0 %v4189_v35  ;;  %2835 = vmatprep.subr.bf16.mxu1 %v4192_v36 }
 0x20c   :  { %2750 = vmatpush1.bf16.msra.mxu0 %v4187_v37  ;;  %2836 = vmatpush1.bf16.msra.mxu1 %v4190_v38 }
 0x20d   :  { %2751 = vmatprep.subr.bf16.mxu0 %v4195_v39  ;;  %2837 = vmatprep.subr.bf16.mxu1 %v4198_v40  ;;  %v1941_v39 = vrot.slane %v1936_v32, %v4764_v54  ;;  %v4321_v32 = vld [vmem:[#allocation11 + $0x324] ss:$16 sps:$4 sm:$0xff]  }
 0x210   :  { %2752 = vmatpush1.bf16.msra.mxu0 %v4193_v41  ;;  %2838 = vmatpush1.bf16.msra.mxu1 %v4196_v42  ;;  %v1948_v42 = vrot.slane %v1943_v33, %v4764_v54  ;;  %v4324_v33 = vld [vmem:[#allocation11 + $0x32c] ss:$16 sps:$4 sm:$0xff]  }
 0x211   :  { %2753 = vmatprep.subr.bf16.mxu0 %v4201_v43  ;;  %2839 = vmatprep.subr.bf16.mxu1 %v4204_v44  ;;  %v1962_v43 = vrot.slane %v1957_v34, %v4764_v54  ;;  %v4319_v34 = vld [vmem:[#allocation11 + $0x320] ss:$16 sps:$4 sm:$0xff]  }
 0x214   :  { %2754 = vmatpush1.bf16.msra.mxu0 %v4199_v45  ;;  %2840 = vmatpush1.bf16.msra.mxu1 %v4202_v46 }
 0x215   :  { %2755 = vmatprep.subr.bf16.mxu0 %v4207_v47  ;;  %2841 = vmatprep.subr.bf16.mxu1 %v4210_v49 }
 0x218   :  { %2756 = vmatpush1.bf16.msra.mxu0 %v4205_v50  ;;  %2842 = vmatpush1.bf16.msra.mxu1 %v4208_v51 }
 0x219   :  { %2757 = vmatprep.subr.bf16.mxu0 %v4213_v53  ;;  %2843 = vmatprep.subr.bf16.mxu1 %v4216_v55 }
 0x21c   :  { %2758 = vmatpush1.bf16.msra.mxu0 %v4211_v56  ;;  %2844 = vmatpush1.bf16.msra.mxu1 %v4214_v57 }
 0x21d   :  { %2759 = vmatprep.subr.bf16.mxu0 %v4219_v59  ;;  %2845 = vmatprep.subr.bf16.mxu1 %v4222_v60 }
 0x220   :  { %2760 = vmatpush1.bf16.msra.mxu0 %v4217_v61  ;;  %2846 = vmatpush1.bf16.msra.mxu1 %v4220_v62  ;;  %v4265_v61 = vld [vmem:[#allocation11 + $0x200] ss:$16 sps:$4 sm:$0xff]   ;;  %v4268_v62 = vld [vmem:[#allocation11 + $0x208] ss:$16 sps:$4 sm:$0xff]  }
 0x221   :  { %2761 = vmatprep.subr.bf16.mxu0 %v4225_v0  ;;  %2847 = vmatprep.subr.bf16.mxu1 %v4228_v1  ;;  %v4273_v1 = vld [vmem:[#allocation11 + $0x224] ss:$16 sps:$4 sm:$0xff]  }
 0x224   :  { %2762 = vmatpush1.bf16.msra.mxu0 %v4223_v2  ;;  %2848 = vmatpush1.bf16.msra.mxu1 %v4226_v4  ;;  %v4276_v2 = vld [vmem:[#allocation11 + $0x22c] ss:$16 sps:$4 sm:$0xff]  }
 0x225   :  { %2763 = vmatprep.subr.bf16.mxu0 %v4231_v5  ;;  %2849 = vmatprep.subr.bf16.mxu1 %v4234_v6  ;;  %v4271_v5 = vld [vmem:[#allocation11 + $0x220] ss:$16 sps:$4 sm:$0xff]   ;;  %v4274_v6 = vld [vmem:[#allocation11 + $0x228] ss:$16 sps:$4 sm:$0xff]  }
 0x228   :  { %2764 = vmatpush1.bf16.msra.mxu0 %v4229_v7  ;;  %2850 = vmatpush1.bf16.msra.mxu1 %v4232_v8  ;;  %v4279_v7 = vld [vmem:[#allocation11 + $0x244] ss:$16 sps:$4 sm:$0xff]   ;;  %v4282_v8 = vld [vmem:[#allocation11 + $0x24c] ss:$16 sps:$4 sm:$0xff]  }
 0x229   :  { %2765 = vmatprep.subr.bf16.mxu0 %v4237_v9  ;;  %2851 = vmatprep.subr.bf16.mxu1 %v4240_v10  ;;  %v4277_v9 = vld [vmem:[#allocation11 + $0x240] ss:$16 sps:$4 sm:$0xff]   ;;  %v4280_v10 = vld [vmem:[#allocation11 + $0x248] ss:$16 sps:$4 sm:$0xff]  }
 0x22c   :  { %2766 = vmatpush1.bf16.msra.mxu0 %v4235_v11  ;;  %2852 = vmatpush1.bf16.msra.mxu1 %v4238_v12  ;;  %v4285_v11 = vld [vmem:[#allocation11 + $0x264] ss:$16 sps:$4 sm:$0xff]   ;;  %v4288_v12 = vld [vmem:[#allocation11 + $0x26c] ss:$16 sps:$4 sm:$0xff]  }
 0x22d   :  { %2767 = vmatprep.subr.bf16.mxu0 %v4243_v13  ;;  %2853 = vmatprep.subr.bf16.mxu1 %v4246_v14  ;;  %v4283_v13 = vld [vmem:[#allocation11 + $0x260] ss:$16 sps:$4 sm:$0xff]   ;;  %v4286_v14 = vld [vmem:[#allocation11 + $0x268] ss:$16 sps:$4 sm:$0xff]  }
 0x230   :  { %2768 = vmatpush1.bf16.msra.mxu0 %v4241_v15  ;;  %2854 = vmatpush1.bf16.msra.mxu1 %v4244_v52  ;;  %v4291_v15 = vld [vmem:[#allocation11 + $0x284] ss:$16 sps:$4 sm:$0xff]   ;;  %v4294_v52 = vld [vmem:[#allocation11 + $0x28c] ss:$16 sps:$4 sm:$0xff]  }
 0x231   :  { %2769 = vmatprep.subr.bf16.mxu0 %v4249_v16  ;;  %2855 = vmatprep.subr.bf16.mxu1 %v4252_v17  ;;  %v4289_v16 = vld [vmem:[#allocation11 + $0x280] ss:$16 sps:$4 sm:$0xff]   ;;  %v4292_v17 = vld [vmem:[#allocation11 + $0x288] ss:$16 sps:$4 sm:$0xff]  }
 0x234   :  { %2770 = vmatpush1.bf16.msra.mxu0 %v4247_v18  ;;  %2856 = vmatpush1.bf16.msra.mxu1 %v4250_v19  ;;  %v4297_v18 = vld [vmem:[#allocation11 + $0x2a4] ss:$16 sps:$4 sm:$0xff]   ;;  %v4300_v19 = vld [vmem:[#allocation11 + $0x2ac] ss:$16 sps:$4 sm:$0xff]  }
 0x235   :  { %2771 = vmatprep.subr.bf16.mxu0 %v4255_v20  ;;  %2857 = vmatprep.subr.bf16.mxu1 %v4258_v21  ;;  %v4295_v20 = vld [vmem:[#allocation11 + $0x2a0] ss:$16 sps:$4 sm:$0xff]   ;;  %v4298_v21 = vld [vmem:[#allocation11 + $0x2a8] ss:$16 sps:$4 sm:$0xff]  }
 0x238   :  { %2772 = vmatpush1.bf16.msra.mxu0 %v4253_v22  ;;  %2858 = vmatpush1.bf16.msra.mxu1 %v4256_v23  ;;  %v4303_v22 = vld [vmem:[#allocation11 + $0x2c4] ss:$16 sps:$4 sm:$0xff]   ;;  %v4306_v23 = vld [vmem:[#allocation11 + $0x2cc] ss:$16 sps:$4 sm:$0xff]  }
 0x239   :  { %2773 = vmatprep.subr.bf16.mxu0 %v4261_v24  ;;  %2859 = vmatprep.subr.bf16.mxu1 %v4264_v25  ;;  %v4301_v24 = vld [vmem:[#allocation11 + $0x2c0] ss:$16 sps:$4 sm:$0xff]   ;;  %v4304_v25 = vld [vmem:[#allocation11 + $0x2c8] ss:$16 sps:$4 sm:$0xff]  }
 0x23c   :  { %2774 = vmatpush1.bf16.msra.mxu0 %v4259_v26  ;;  %2860 = vmatpush1.bf16.msra.mxu1 %v4262_v27  ;;  %v4309_v26 = vld [vmem:[#allocation11 + $0x2e4] ss:$16 sps:$4 sm:$0xff]   ;;  %v4312_v27 = vld [vmem:[#allocation11 + $0x2ec] ss:$16 sps:$4 sm:$0xff]  }
 0x23d   :  { %2786 = vmatprep.subr.bf16.mxu0 %v4267_v28  ;;  %2872 = vmatprep.subr.bf16.mxu1 %v4270_v29  ;;  %v4307_v28 = vld [vmem:[#allocation11 + $0x2e0] ss:$16 sps:$4 sm:$0xff]   ;;  %v4310_v29 = vld [vmem:[#allocation11 + $0x2e8] ss:$16 sps:$4 sm:$0xff]  }
 0x2d2   :  { %v1810_v35 = vpop.f32.mrb[4].mxu0  ;;  %v4790_v36 = vpop.f32.mrb[4].mxu1 }
 0x2d3   :  { %v1812_v37 = vpop.f32.mrb[5].mxu0  ;;  %v1898_v38 = vpop.f32.mrb[5].mxu1 }
 0x2d4   :  { %v1814_v40 = vpop.f32.mrb[6].mxu0  ;;  %v4793_v41 = vpop.f32.mrb[6].mxu1 }
 0x2d5   :  { %v1905_v44 = vpack.c.bf16 %v1814_v40, %v1810_v35  ;;  %v1907_v45 = vpack.c.bf16 %v4793_v41, %v4790_v36  ;;  %v1816_v46 = vpop.f32.mrb[7].mxu0  ;;  %v1902_v47 = vpop.f32.mrb[7].mxu1  ;;  %v4322_v35 = vld [vmem:[#allocation11 + $0x328] ss:$16 sps:$4 sm:$0xff]  }
 0x2d6   :  { %v1906_v49 = vpack.c.bf16 %v1816_v46, %v1812_v37  ;;  %v1908_v50 = vpack.c.bf16 %v1902_v47, %v1898_v38  ;;  %v4327_v37 = vld [vmem:[#allocation11 + $0x344] ss:$16 sps:$4 sm:$0xff]   ;;  %v4330_v38 = vld [vmem:[#allocation11 + $0x34c] ss:$16 sps:$4 sm:$0xff]   ;;  %v4328_v40 = vld [vmem:[#allocation11 + $0x348] ss:$16 sps:$4 sm:$0xff]   ;;  %v1933_v47 = vcombine.high %v4786_v31, %v4786_v31 }
 0x2d7   :  { %v1963_v51 = vadd.bf16 %v1941_v39, %v1905_v44  ;;  %v4325_v39 = vld [vmem:[#allocation11 + $0x340] ss:$16 sps:$4 sm:$0xff]   ;;  %v4334_v46 = vld [vmem:[#allocation11 + $0x368] ss:$16 sps:$4 sm:$0xff]   ;;  %v4351_v31 = vld [vmem:[#allocation11 + $0x3c4] ss:$16 sps:$4 sm:$0xff]  }
 0x2d8   :  { %v1964_v53 = vadd.bf16 %v1948_v42, %v1906_v49  ;;  %v1966_v55 = vadd.bf16 %v1962_v43, %v1908_v50  ;;  %v4333_v42 = vld [vmem:[#allocation11 + $0x364] ss:$16 sps:$4 sm:$0xff]   ;;  %v4336_v43 = vld [vmem:[#allocation11 + $0x36c] ss:$16 sps:$4 sm:$0xff]   ;;  %v4331_v44 = vld [vmem:[#allocation11 + $0x360] ss:$16 sps:$4 sm:$0xff]  }
 0x2d9   :  { %v1967_v56 = vmul.bf16 1045249613, %v1963_v51  ;;  %v4339_v49 = vld [vmem:[#allocation11 + $0x384] ss:$16 sps:$4 sm:$0xff]   ;;  %v4342_v50 = vld [vmem:[#allocation11 + $0x38c] ss:$16 sps:$4 sm:$0xff]  }
 0x2da   :  { %v1968_v57 = vmul.bf16 1045249613, %v1964_v53  ;;  %v1970_v59 = vmul.bf16 1045249613, %v1966_v55  ;;  %v4365_v36 = vld [vmem:[#allocation13 + $0x48] sm:$0xff]  }
 0x2db   :  { %v1971_v0 = vmax.bf16 %v1967_v56, %v1963_v51  ;;  %v4337_v51 = vld [vmem:[#allocation11 + $0x380] ss:$16 sps:$4 sm:$0xff]   ;;  %v4345_v56 = vld [vmem:[#allocation11 + $0x3a4] ss:$16 sps:$4 sm:$0xff]   ;;  %v4366_v41 = vld [vmem:[#allocation13 + $0xc8] sm:$0xff]  }
 0x2dc   :  { %v1972_v60 = vmax.bf16 %v1968_v57, %v1964_v53  ;;  %v1974_v4 = vmax.bf16 %v1970_v59, %v1966_v55  ;;  %v4340_v53 = vld [vmem:[#allocation11 + $0x388] ss:$16 sps:$4 sm:$0xff]   ;;  %v1950_v55 = vpack.i.b16 %v1933_v47, %v1933_v47  ;;  %v4348_v57 = vld [vmem:[#allocation11 + $0x3ac] ss:$16 sps:$4 sm:$0xff]   ;;  %v4343_v59 = vld [vmem:[#allocation11 + $0x3a0] ss:$16 sps:$4 sm:$0xff]  }
 0x2de   :  { %2775 = vmatprep.mubr.bf16.mxu0 %v1972_v60  ;;  %2861 = vmatprep.mubr.bf16.mxu1 %v1972_v60  ;;  %v4346_v60 = vld [vmem:[#allocation11 + $0x3a8] ss:$16 sps:$4 sm:$0xff]  }
 0x2df   :  { %2776 = vmatmul.mubr.bf16.vlgmr.msra.gmra.mrb[8].mxu0 %v1971_v0  ;;  %2862 = vmatmul.mubr.bf16.vlgmr.msra.gmra.mrb[8].mxu1 %v1971_v0  ;;  %v4349_v0 = vld [vmem:[#allocation11 + $0x3c0] ss:$16 sps:$4 sm:$0xff]  }
 0x2e0   :  { %2787 = vmatpush1.bf16.msra.mxu0 %v4265_v61  ;;  %2873 = vmatpush1.bf16.msra.mxu1 %v4268_v62  ;;  %v1955_v61 = vrot.slane %v1950_v55, %v4764_v54  ;;  %v4354_v62 = vld [vmem:[#allocation11 + $0x3cc] ss:$16 sps:$4 sm:$0xff]  }
 0x2e1   :  { %2818 = vmatprep.mubr.bf16.mxu0 %v1974_v4  ;;  %2904 = vmatprep.mubr.bf16.mxu1 %v1974_v4  ;;  %v4357_v4 = vld [vmem:[#allocation11 + $0x3e4] ss:$16 sps:$4 sm:$0xff]  }
 0x2e2   :  { %2788 = vmatprep.subr.bf16.mxu0 %v4273_v1  ;;  %2874 = vmatprep.subr.bf16.mxu1 %v4276_v2  ;;  %v4352_v1 = vld [vmem:[#allocation11 + $0x3c8] ss:$16 sps:$4 sm:$0xff]   ;;  %v1965_v2 = vadd.bf16 %v1955_v61, %v1907_v45 }
 0x2e3   :  { %v4367_v45 = vld [vmem:[#allocation13 + $0x8] sm:$0xff]  }
 0x2e4   :  { %2789 = vmatpush1.bf16.msra.mxu0 %v4271_v5  ;;  %2875 = vmatpush1.bf16.msra.mxu1 %v4274_v6  ;;  %v4360_v5 = vld [vmem:[#allocation11 + $0x3ec] ss:$16 sps:$4 sm:$0xff]   ;;  %v4355_v6 = vld [vmem:[#allocation11 + $0x3e0] ss:$16 sps:$4 sm:$0xff]  }
 0x2e5   :  { %2790 = vmatprep.subr.bf16.mxu0 %v4279_v7  ;;  %2876 = vmatprep.subr.bf16.mxu1 %v4282_v8  ;;  %v4358_v7 = vld [vmem:[#allocation11 + $0x3e8] ss:$16 sps:$4 sm:$0xff]   ;;  %v1969_v8 = vmul.bf16 1045249613, %v1965_v2 }
 0x2e8   :  { %2791 = vmatpush1.bf16.msra.mxu0 %v4277_v9  ;;  %2877 = vmatpush1.bf16.msra.mxu1 %v4280_v10  ;;  %v4361_v9 = vld [vmem:[#allocation13 + $0x40] sm:$0xff]  }
 0x2e9   :  { %2792 = vmatprep.subr.bf16.mxu0 %v4285_v11  ;;  %2878 = vmatprep.subr.bf16.mxu1 %v4288_v12  ;;  %v4362_v10 = vld [vmem:[#allocation13 + $0xc0] sm:$0xff]  }
 0x2ea   :  { %v4363_v11 = vld [vmem:[#allocation13] sm:$0xff]  }
 0x2eb   :  { %v4364_v12 = vld [vmem:[#allocation13 + $0x80] sm:$0xff]  }
 0x2ec   :  { %2793 = vmatpush1.bf16.msra.mxu0 %v4283_v13  ;;  %2879 = vmatpush1.bf16.msra.mxu1 %v4286_v14  ;;  %v1973_v13 = vmax.bf16 %v1969_v8, %v1965_v2  ;;  %v4368_v14 = vld [vmem:[#allocation13 + $0x88] sm:$0xff]  }
 0x2ed   :  { %2794 = vmatprep.subr.bf16.mxu0 %v4291_v15  ;;  %2880 = vmatprep.subr.bf16.mxu1 %v4294_v52  ;;  %v4369_v15 = vld [vmem:[#allocation13 + $0x50] sm:$0xff]  }
 0x2ee   :  { %v4370_v52 = vld [vmem:[#allocation13 + $0xd0] sm:$0xff]  }
 0x2f0   :  { %2795 = vmatpush1.bf16.msra.mxu0 %v4289_v16  ;;  %2881 = vmatpush1.bf16.msra.mxu1 %v4292_v17  ;;  %v4371_v16 = vld [vmem:[#allocation13 + $0x10] sm:$0xff]  }
 0x2f1   :  { %2796 = vmatprep.subr.bf16.mxu0 %v4297_v18  ;;  %2882 = vmatprep.subr.bf16.mxu1 %v4300_v19  ;;  %v4372_v17 = vld [vmem:[#allocation13 + $0x90] sm:$0xff]   ;;  %v4373_v18 = vld [vmem:[#allocation13 + $0x58] sm:$0xff]  }
 0x2f2   :  { %v4374_v19 = vld [vmem:[#allocation13 + $0xd8] sm:$0xff]  }
 0x2f4   :  { %2797 = vmatpush1.bf16.msra.mxu0 %v4295_v20  ;;  %2883 = vmatpush1.bf16.msra.mxu1 %v4298_v21  ;;  %v4375_v20 = vld [vmem:[#allocation13 + $0x18] sm:$0xff]  }
 0x2f5   :  { %2798 = vmatprep.subr.bf16.mxu0 %v4303_v22  ;;  %2884 = vmatprep.subr.bf16.mxu1 %v4306_v23  ;;  %v4376_v21 = vld [vmem:[#allocation13 + $0x98] sm:$0xff]   ;;  %v4377_v22 = vld [vmem:[#allocation13 + $0x60] sm:$0xff]  }
 0x2f6   :  { %v4378_v23 = vld [vmem:[#allocation13 + $0xe0] sm:$0xff]  }
 0x2f8   :  { %2799 = vmatpush1.bf16.msra.mxu0 %v4301_v24  ;;  %2885 = vmatpush1.bf16.msra.mxu1 %v4304_v25  ;;  %v4379_v24 = vld [vmem:[#allocation13 + $0x20] sm:$0xff]  }
 0x2f9   :  { %2800 = vmatprep.subr.bf16.mxu0 %v4309_v26  ;;  %2886 = vmatprep.subr.bf16.mxu1 %v4312_v27  ;;  %v4380_v25 = vld [vmem:[#allocation13 + $0xa0] sm:$0xff]   ;;  %v4381_v26 = vld [vmem:[#allocation13 + $0x68] sm:$0xff]  }
 0x2fa   :  { %v4382_v27 = vld [vmem:[#allocation13 + $0xe8] sm:$0xff]  }
 0x2fc   :  { %2801 = vmatpush1.bf16.msra.mxu0 %v4307_v28  ;;  %2887 = vmatpush1.bf16.msra.mxu1 %v4310_v29  ;;  %v4383_v28 = vld [vmem:[#allocation13 + $0x28] sm:$0xff]  }
 0x2fd   :  { %2802 = vmatprep.subr.bf16.mxu0 %v4315_v58  ;;  %2888 = vmatprep.subr.bf16.mxu1 %v4318_v63  ;;  %v4384_v29 = vld [vmem:[#allocation13 + $0xa8] sm:$0xff]   ;;  %v4385_v58 = vld [vmem:[#allocation13 + $0x70] sm:$0xff]  }
 0x2fe   :  { %v4386_v63 = vld [vmem:[#allocation13 + $0xf0] sm:$0xff]  }
 0x300   :  { %2803 = vmatpush1.bf16.msra.mxu0 %v4313_v3  ;;  %2889 = vmatpush1.bf16.msra.mxu1 %v4316_v30  ;;  %v4387_v3 = vld [vmem:[#allocation13 + $0x30] sm:$0xff]  }
 0x301   :  { %2804 = vmatprep.subr.bf16.mxu0 %v4321_v32  ;;  %2890 = vmatprep.subr.bf16.mxu1 %v4324_v33  ;;  %v4388_v30 = vld [vmem:[#allocation13 + $0xb0] sm:$0xff]   ;;  %v4389_v32 = vld [vmem:[#allocation13 + $0x78] sm:$0xff]  }
 0x302   :  { %v4390_v33 = vld [vmem:[#allocation13 + $0xf8] sm:$0xff]  }
 0x304   :  { %2805 = vmatpush1.bf16.msra.mxu0 %v4319_v34  ;;  %2891 = vmatpush1.bf16.msra.mxu1 %v4322_v35  ;;  %v4391_v34 = vld [vmem:[#allocation13 + $0x38] sm:$0xff]  }
 0x305   :  { %2806 = vmatprep.subr.bf16.mxu0 %v4327_v37  ;;  %2892 = vmatprep.subr.bf16.mxu1 %v4330_v38  ;;  %v4392_v35 = vld [vmem:[#allocation13 + $0xb8] sm:$0xff]  }
 0x306   :  { %v3708_v37 = vld.sshfl [vmem:[%s4837_s8] sm:$0x33 pattern:$0x75316420]  ;;  %s4592_s8 = smov [#allocation14]  }
 0x307   :  { %v2928_v38 = vcombine.high %v3708_v37, %v3708_v37  ;;  %s3338_s25 = sshll.u32 %s4592_s8, 4  ;;  %s3339_s25 = int_to_ptr.vmem [resolvable:$true] %s3338_s25 }
 0x308   :  { %2807 = vmatpush1.bf16.msra.mxu0 %v4325_v39  ;;  %2893 = vmatpush1.bf16.msra.mxu1 %v4328_v40  ;;  %v2935_v39 = vrot.slane %v3708_v37, %v4756_v48  ;;  %s4547_s26 = scalar_lea.vmem %s3339_s25, 128  ;;  %p4552_p1 = scmp.lt.s32.totalorder %s3339_s25, %s3339_s25 }
 0x309   :  { %2808 = vmatprep.subr.bf16.mxu0 %v4333_v42  ;;  %2894 = vmatprep.subr.bf16.mxu1 %v4336_v43  ;;  %v2942_v40 = vrot.slane %v2928_v38, %v4756_v48  ;;  %p4548_p0 = scmp.ne.s32.totalorder %s3339_s25, %s4547_s26  ;;  %p4553_p2 = scmp.lt.s32.totalorder %s4547_s26, %s4547_s26 }
 0x30a   :  { %v2943_v42 = vcombine.high %v2935_v39, %v2935_v39 }
 0x30b   :  { %v2944_v43 = vcombine.high %v2942_v40, %v2942_v40  ;;  %v2953_v47 = vpack.i.b16 %v2942_v40, %v2942_v40  ;;  %p4554_p3 = por %p4553_p2, %p4552_p1 }
 0x30c   :  { %2809 = vmatpush1.bf16.msra.mxu0 %v4331_v44  ;;  %2895 = vmatpush1.bf16.msra.mxu1 %v4334_v46  ;;  %v2946_v44 = vpack.i.b16 %v2935_v39, %v2935_v39  ;;  %v2960_v46 = vpack.i.b16 %v2943_v42, %v2943_v42 }
 0x30d   :  { %2810 = vmatprep.subr.bf16.mxu0 %v4339_v49  ;;  %2896 = vmatprep.subr.bf16.mxu1 %v4342_v50  ;;  %v2967_v49 = vpack.i.b16 %v2944_v43, %v2944_v43  ;;  %v2958_v61 = vrot.slane %v2953_v47, %v4764_v54  ;;  %p4555_p4 = pnand %p4554_p3, %p4548_p0 }
 0x30f   :  { %v2972_v48 = vrot.slane %v2967_v49, %v4764_v54 }
 0x310   :  { %2811 = vmatpush1.bf16.msra.mxu0 %v4337_v51  ;;  %2897 = vmatpush1.bf16.msra.mxu1 %v4340_v53 }
 0x311   :  { %2812 = vmatprep.subr.bf16.mxu0 %v4345_v56  ;;  %2898 = vmatprep.subr.bf16.mxu1 %v4348_v57  ;;  %v2951_v56 = vrot.slane %v2946_v44, %v4764_v54  ;;  %v2965_v57 = vrot.slane %v2960_v46, %v4764_v54 }
 0x314   :  { %2813 = vmatpush1.bf16.msra.mxu0 %v4343_v59  ;;  %2899 = vmatpush1.bf16.msra.mxu1 %v4346_v60 }
 0x315   :  { %2814 = vmatprep.subr.bf16.mxu0 %v4351_v31  ;;  %2900 = vmatprep.subr.bf16.mxu1 %v4354_v62 }
 0x318   :  { %2815 = vmatpush1.bf16.msra.mxu0 %v4349_v0  ;;  %2901 = vmatpush1.bf16.msra.mxu1 %v4352_v1 }
 0x319   :  { %2816 = vmatprep.subr.bf16.mxu0 %v4357_v4  ;;  %2902 = vmatprep.subr.bf16.mxu1 %v4360_v5 }
 0x31c   :  { %2817 = vmatpush1.bf16.msra.mxu0 %v4355_v6  ;;  %2903 = vmatpush1.bf16.msra.mxu1 %v4358_v7 }
 0x31d   :  { %3750 = vmatprep.subr.bf16.mxu0 %v4361_v9  ;;  %3772 = vmatprep.subr.bf16.mxu1 %v4362_v10 }
 0x31f   :  { %2819 = vmatmul.mubr.bf16.vlgmr.msra.gmra.mrb[8].mxu0 %v1973_v13  ;;  %2905 = vmatmul.mubr.bf16.vlgmr.msra.gmra.mrb[8].mxu1 %v1973_v13 }
 0x320   :  { %3751 = vmatpush3.bf16.msra.mxu0 %v4363_v11  ;;  %3773 = vmatpush3.bf16.msra.mxu1 %v4364_v12 }
 0x321   :  { %3752 = vmatprep.subr.bf16.mxu0 %v4365_v36  ;;  %3774 = vmatprep.subr.bf16.mxu1 %v4366_v41 }
 0x324   :  { %3753 = vmatpush3.bf16.msra.mxu0 %v4367_v45  ;;  %3775 = vmatpush3.bf16.msra.mxu1 %v4368_v14 }
 0x325   :  { %3754 = vmatprep.subr.bf16.mxu0 %v4369_v15  ;;  %3776 = vmatprep.subr.bf16.mxu1 %v4370_v52 }
 0x328   :  { %3755 = vmatpush3.bf16.msra.mxu0 %v4371_v16  ;;  %3777 = vmatpush3.bf16.msra.mxu1 %v4372_v17 }
 0x329   :  { %3756 = vmatprep.subr.bf16.mxu0 %v4373_v18  ;;  %3778 = vmatprep.subr.bf16.mxu1 %v4374_v19 }
 0x32c   :  { %3757 = vmatpush3.bf16.msra.mxu0 %v4375_v20  ;;  %3779 = vmatpush3.bf16.msra.mxu1 %v4376_v21 }
 0x32d   :  { %3758 = vmatprep.subr.bf16.mxu0 %v4377_v22  ;;  %3780 = vmatprep.subr.bf16.mxu1 %v4378_v23 }
 0x330   :  { %3759 = vmatpush3.bf16.msra.mxu0 %v4379_v24  ;;  %3781 = vmatpush3.bf16.msra.mxu1 %v4380_v25 }
 0x331   :  { %3760 = vmatprep.subr.bf16.mxu0 %v4381_v26  ;;  %3782 = vmatprep.subr.bf16.mxu1 %v4382_v27 }
 0x334   :  { %3761 = vmatpush3.bf16.msra.mxu0 %v4383_v28  ;;  %3783 = vmatpush3.bf16.msra.mxu1 %v4384_v29 }
 0x335   :  { %3762 = vmatprep.subr.bf16.mxu0 %v4385_v58  ;;  %3784 = vmatprep.subr.bf16.mxu1 %v4386_v63 }
 0x338   :  { %3763 = vmatpush3.bf16.msra.mxu0 %v4387_v3  ;;  %3785 = vmatpush3.bf16.msra.mxu1 %v4388_v30 }
 0x339   :  { %3764 = vmatprep.subr.bf16.mxu0 %v4389_v32  ;;  %3786 = vmatprep.subr.bf16.mxu1 %v4390_v33 }
 0x33c   :  { %3765 = vmatpush3.bf16.msra.mxu0 %v4391_v34  ;;  %3787 = vmatpush3.bf16.msra.mxu1 %v4392_v35 }
 0x3f2   :  { %v2820_v50 = vpop.f32.mrb[8].mxu0  ;;  %v2906_v51 = vpop.f32.mrb[8].mxu1 }
 0x3f3   :  { %v2822_v53 = vpop.f32.mrb[9].mxu0  ;;  %v2908_v55 = vpop.f32.mrb[9].mxu1 }
 0x3f4   :  { %v2824_v59 = vpop.f32.mrb[10].mxu0  ;;  %v2910_v60 = vpop.f32.mrb[10].mxu1 }
 0x3f5   :  { %v2915_v31 = vpack.c.bf16 %v2824_v59, %v2820_v50  ;;  %v2917_v62 = vpack.c.bf16 %v2910_v60, %v2906_v51  ;;  %v2826_v0 = vpop.f32.mrb[11].mxu0  ;;  %v2912_v1 = vpop.f32.mrb[11].mxu1 }
 0x3f6   :  { %v2916_v2 = vpack.c.bf16 %v2826_v0, %v2822_v53  ;;  %v2918_v4 = vpack.c.bf16 %v2912_v1, %v2908_v55 }
 0x3f7   :  { %v2973_v5 = vadd.bf16 %v2951_v56, %v2915_v31  ;;  %v2975_v6 = vadd.bf16 %v2965_v57, %v2917_v62 }
 0x3f8   :  { %v2974_v7 = vadd.bf16 %v2958_v61, %v2916_v2  ;;  %v2976_v8 = vadd.bf16 %v2972_v48, %v2918_v4 }
 0x3f9   :  { %v2977_v9 = vmul.bf16 1045249613, %v2973_v5  ;;  %v2979_v10 = vmul.bf16 1045249613, %v2975_v6 }
 0x3fa   :  { %v2978_v11 = vmul.bf16 1045249613, %v2974_v7  ;;  %v2980_v12 = vmul.bf16 1045249613, %v2976_v8 }
 0x3fb   :  { %v2981_v41 = vmax.bf16 %v2977_v9, %v2973_v5  ;;  %v2983_v45 = vmax.bf16 %v2979_v10, %v2975_v6 }
 0x3fc   :  { %v2982_v13 = vmax.bf16 %v2978_v11, %v2974_v7  ;;  %v2984_v36 = vmax.bf16 %v2980_v12, %v2976_v8 }
 0x3fe   :  { %3273 = vmatprep.mubr.bf16.mxu0 %v2982_v13  ;;  %3314 = vmatprep.mubr.bf16.mxu1 %v2984_v36 }
 0x3ff   :  { %3274 = vmatmul.mubr.bf16.vlgmr.msra.gmra.mrb[12].mxu0 %v2981_v41  ;;  %3315 = vmatmul.mubr.bf16.vlgmr.msra.gmra.mrb[12].mxu1 %v2983_v45 }
 0x4d2   :  { %v3766_v54 = vpop.f32.mrb[12].mxu0  ;;  %v3788_v14 = vpop.f32.mrb[12].mxu1 }
 0x4d3   :  { %v3767_v15 = vpop.f32.mrb[13].mxu0  ;;  %v3789_v52 = vpop.f32.mrb[13].mxu1 }
 0x4d4   :  { %v3768_v16 = vadd.f32 %v3767_v15, %v3766_v54  ;;  %v3790_v17 = vadd.f32 %v3789_v52, %v3788_v14  ;;  %v3769_v18 = vpop.f32.mrb[14].mxu0  ;;  %v3791_v19 = vpop.f32.mrb[14].mxu1 }
 0x4d5   :  { %v3770_v20 = vpop.f32.mrb[15].mxu0  ;;  %v3792_v21 = vpop.f32.mrb[15].mxu1 }
 0x4d6   :  { %v3317_v22 = vadd.f32 %v3790_v17, %v3768_v16  ;;  %v3771_v23 = vadd.f32 %v3770_v20, %v3769_v18  ;;  %v3793_v24 = vadd.f32 %v3792_v21, %v3791_v19 }
 0x4d8   :  { %v3320_v25 = vadd.f32 %v3793_v24, %v3771_v23 }
 0x4da   :  { %v3748_v26 = vpack.c.bf16 %v3320_v25, %v3317_v22 }
 0x4dc   :  { %3749 = vst [vmem:[#allocation14] sm:$0xff] %v3748_v26  }
 0x4dd   :  { %4558 = shalt.err (!%p4555_p4)
}
 0x4de   :  { %s4559_s30 = scalar_lea.hbm %s4839_s10, 128 }
 0x4df   :  { %p4560_p5 = scmp.ne.s32.totalorder %s4839_s10, %s4559_s30  ;;  %p4563_p6 = scmp.lt.u32.totalorder %s4559_s30, %s4839_s10 }
 0x4e1   :  { %p4565_p7 = pnand %p4563_p6, %p4560_p5 }
 0x4e3   :  { %4568 = shalt.err (!%p4565_p7)
}
 0x4e4   :  { %3344 = dma.vmem_to_hbm [thread:$0]  %s3339_s25, 128, %s4839_s10, [#allocation4], %s4580_s23, %s4580_s23, %s4581_s24  }
 0x4e5   :  { %4577 = dma.done.wait [#allocation4], 128  }
 0x4e6   :  { %4578 = vsyncadd [#allocation4], 4294967168 }
 0x4e7   :  { %3348 = vsyncpa [#allocation3], 1 }
 0x4e8   :  { %3349 = vsyncpa [#allocation6], 1 }
 0x4e9   :  { %3350 = vsyncpa [#allocation9], 1 }
 0x4ea   :  { %3351 = vsyncpa [#allocation12], 1 }
 0x4eb   :  { %3352 = vsyncpa [#allocation4], 1 }

</bundles_post_ra>
